<compile_context>
chip_gen: v6e
topology: v6e:2x2x1
jax: 0.10.0
libtpu: 0.0.40
codegen_flags: <defaults>
</compile_context>

<pallas_src>
import functools
import math

import jax
import jax.numpy as jnp
from jax import lax
from jax.experimental import pallas as pl
from jax.experimental.pallas import tpu as pltpu


def _vmem_limit_bytes():
    """Generation-aware VMEM limit: ~half the physical capacity.

    -> 64 MiB on v5e/v6e (128 MiB physical), 32 MiB on v7x (64 MiB physical), leaving
    headroom for compiler-internal scratch.  The fused kernel itself needs < 2 MiB at
    the tested sizes, so this only matters when scaling tiles / num_chunks.
    """
    try:
        cap = int(pltpu.get_tpu_info().vmem_capacity_bytes)
    except Exception:  # interpret mode / older runtime: safe fallback
        cap = 64 * 1024 * 1024
    return max(min(cap // 2, 100 * 1024 * 1024), 16 * 1024 * 1024)


def _linear_t(x, w_ref, b_ref):
    # torch nn.Linear: y = x @ W^T + b   (W is (out_features, in_features))
    y = lax.dot_general(x, w_ref[...], (((1,), (1,)), ((), ())),
                        preferred_element_type=jnp.float32)
    return y + b_ref[...]


def _fused_dca_kernel(x_ref, wq_ref, wk_ref, wv_ref, wo_ref,
                      bq_ref, bk_ref, bv_ref, bo_ref, o_ref):
    """One grid step = one TQ-row query tile of the (single-chunk) sequence.

    QKV projections, chunk attention, the attn_out + cross_attn_out add and the output
    projection all happen in VMEM; only the final (TQ, E) tile is written back to HBM.
    """
    seq_len, embed = x_ref.shape
    tq = o_ref.shape[0]
    scale = 1.0 / math.sqrt(embed)

    # K / V projections for the FULL sequence.  Recomputed per grid step (~0.1 us of
    # MXU work at this size) so the query-row axis can stay "parallel" for v7x's two
    # TensorCores without any cross-step scratch dependency.
    x_full = x_ref[...]                               # (S, E), grid-invariant block
    k_full = _linear_t(x_full, wk_ref, bk_ref)        # (S, E) f32
    v_full = _linear_t(x_full, wv_ref, bv_ref)        # (S, E) f32

    # Q projection for this tile only, 1/sqrt(E) folded into Q once (cheaper than
    # scaling each (TQ, S) score tile).
    row0 = pl.multiple_of(pl.program_id(0) * tq, tq)
    q = _linear_t(x_ref[pl.ds(row0, tq), :], wq_ref, bq_ref) * scale   # (TQ, E)

    # Single-chunk attention: scores (TQ, S), stable softmax, then attention output.
    s = lax.dot_general(q, k_full, (((1,), (1,)), ((), ())),
                        preferred_element_type=jnp.float32)            # (TQ, S)
    s = s - jnp.max(s, axis=-1, keepdims=True)
    p = jnp.exp(s)
    denom = jnp.sum(p, axis=-1, keepdims=True)                         # (TQ, 1)
    o = lax.dot_general(p, v_full, (((1,), (0,)), ((), ())),
                        preferred_element_type=jnp.float32)            # (TQ, E)
    # exact per-row normalization on the (TQ, E) output (cheaper than normalizing the
    # (TQ, S) probabilities; approx reciprocal intentionally avoided for tolerance)
    o = o * (1.0 / denom)

    # attn_out + cross_attn_out: with num_chunks == 1 (the only shape the reference
    # defines) the two terms are the identical computation, so add o to itself.
    combined = o + o
    out = _linear_t(combined, wo_ref, bo_ref)                          # (TQ, E)
    o_ref[...] = out.astype(o_ref.dtype)


def dual_chunk_attention_forward(x, params, chunk_size, *, query_tile=128):
    B, S, E = x.shape
    num_chunks = S // chunk_size
    # The reference `attn_out + cross_attn_out` broadcast (and hence forward()) is only
    # defined for batch == 1 and num_chunks == 1; the fused kernel targets that domain.
    # TODO(synk): a general (B, num_chunks) path would need a different combine rule --
    # the PyTorch reference itself raises there, so it is intentionally not implemented.
    assert B == 1 and num_chunks == 1 and S == num_chunks * chunk_size, (
        "reference forward is only defined for batch == 1 and seq_len == chunk_size")

    tq = query_tile
    if tq <= 0 or S % tq != 0 or tq % 8 != 0:
        tq = S                                   # single-tile fallback, no padding
    grid = (S // tq,)

    x2d = x.reshape(S, E)
    bq = params["bq"].reshape(1, E)
    bk = params["bk"].reshape(1, E)
    bv = params["bv"].reshape(1, E)
    bo = params["bo"].reshape(1, E)

    def full(shape):
        return pl.BlockSpec(shape, lambda i: (0,) * len(shape))

    # Grid-invariant blocks: whole x, the four weights and the four biases.
    # TODO(synk): pipeline_mode=pl.Buffered(1) on these would halve their VMEM
    # footprint at scale; irrelevant at E=128 so left off for compile safety.
    in_specs = [
        full((S, E)),                                               # x
        full((E, E)), full((E, E)), full((E, E)), full((E, E)),     # wq wk wv wo
        full((1, E)), full((1, E)), full((1, E)), full((1, E)),     # bq bk bv bo
    ]

    out = pl.pallas_call(
        _fused_dca_kernel,
        out_shape=jax.ShapeDtypeStruct((S, E), x.dtype),
        grid=grid,
        in_specs=in_specs,
        out_specs=pl.BlockSpec((tq, E), lambda i: (i, 0)),
        compiler_params=pltpu.CompilerParams(
            dimension_semantics=("parallel",),
            vmem_limit_bytes=_vmem_limit_bytes()),
    )(x2d, params["wq"], params["wk"], params["wv"], params["wo"], bq, bk, bv, bo)

    # reference output shape: (B, num_chunks * num_chunks, chunk_size, E) == (1,1,S,E)
    return out.reshape(1, 1, S, E)


# pure-JAX reference mirroring the PyTorch code op-for-op (for validation)
def reference_forward(x, params, chunk_size):
    B, S, E = x.shape
    NC = S // chunk_size
    lin = lambda y, w, b: jnp.matmul(y, w.T) + b
    Q = lin(x, params["wq"], params["bq"]).reshape(B, NC, chunk_size, E)
    K = lin(x, params["wk"], params["bk"]).reshape(B, NC, chunk_size, E)
    V = lin(x, params["wv"], params["bv"]).reshape(B, NC, chunk_size, E)
    scale = E ** 0.5
    attn_out = []
    for b in range(B):
        s = jnp.einsum("ncd,nkd->nck", Q[b], K[b]) / scale
        p = jax.nn.softmax(s, axis=-1)
        attn_out.append(jnp.einsum("nck,nkd->ncd", p, V[b]))
    attn_out = jnp.concatenate(attn_out, axis=2)
    cross_list = []
    for i in range(NC):
        s = jnp.einsum("bcd,bnkd->bnck", Q[:, i], K) / scale
        p = jax.nn.softmax(s, axis=-1)
        cross_list.append(jnp.einsum("bnck,bkd->bncd", p, V[:, i]))
    cross = jnp.concatenate(cross_list, axis=1)
    combined = attn_out + cross
    return lin(combined, params["wo"], params["bo"])


if __name__ == "__main__":
    embed_size, num_heads, chunk_size = 128, 4, 256   # num_heads is unused by forward()
    batch, seq_len = 1, 256                           # num_chunks == 1 (required by the reference broadcast)
    query_tile = 128                                  # 2 "parallel" grid steps -> both v7x TensorCores

    key = jax.random.PRNGKey(0)
    kx, kq, kk, kv, ko = jax.random.split(key, 5)

    def init_linear(k, e):
        kw, kb = jax.random.split(k)
        bound = 1.0 / math.sqrt(e)
        w = jax.random.uniform(kw, (e, e), jnp.float32, minval=-bound, maxval=bound)
        b = jax.random.uniform(kb, (e,), jnp.float32, minval=-bound, maxval=bound)
        return w, b

    wq, bq = init_linear(kq, embed_size)
    wk, bk = init_linear(kk, embed_size)
    wv, bv = init_linear(kv, embed_size)
    wo, bo = init_linear(ko, embed_size)
    params = dict(wq=wq, bq=bq, wk=wk, bk=bk, wv=wv, bv=bv, wo=wo, bo=bo)

    x = jax.random.normal(kx, (batch, seq_len, embed_size), jnp.float32)

    fwd = jax.jit(functools.partial(dual_chunk_attention_forward,
                                    chunk_size=chunk_size, query_tile=query_tile))
    out = jax.block_until_ready(fwd(x, params))

    ref = reference_forward(x, params, chunk_size)
    assert out.shape == ref.shape, (out.shape, ref.shape)
    max_err = float(jnp.max(jnp.abs(out - ref)))
    assert jnp.allclose(out, ref, atol=1e-4, rtol=1e-4), max_err
    print("KERNEL_OK")
</pallas_src>

<mosaic_0001>
module attributes {stable_mosaic.version = 11 : i64} {
  func.func @_fused_dca_kernel(%arg0: i32, %arg1: memref<256x128xf32, #tpu.memory_space<vmem>>, %arg2: memref<128x128xf32, #tpu.memory_space<vmem>>, %arg3: memref<128x128xf32, #tpu.memory_space<vmem>>, %arg4: memref<128x128xf32, #tpu.memory_space<vmem>>, %arg5: memref<128x128xf32, #tpu.memory_space<vmem>>, %arg6: memref<1x128xf32, #tpu.memory_space<vmem>>, %arg7: memref<1x128xf32, #tpu.memory_space<vmem>>, %arg8: memref<1x128xf32, #tpu.memory_space<vmem>>, %arg9: memref<1x128xf32, #tpu.memory_space<vmem>>, %arg10: memref<128x128xf32, #tpu.memory_space<vmem>>) attributes {dimension_semantics = [#tpu.dimension_semantics<parallel>], iteration_bounds = array<i64: 2>, scalar_prefetch = 0 : i64, scratch_operands = 0 : i64, tpu.core_type = #tpu.core_type<tc>, window_params = [{pipeline_mode = #tpu.pipeline_mode<synchronous>, transform_indices = @transform_0, window_bounds = array<i64: 256, 128>}, {pipeline_mode = #tpu.pipeline_mode<synchronous>, transform_indices = @transform_1, window_bounds = array<i64: 128, 128>}, {pipeline_mode = #tpu.pipeline_mode<synchronous>, transform_indices = @transform_2, window_bounds = array<i64: 128, 128>}, {pipeline_mode = #tpu.pipeline_mode<synchronous>, transform_indices = @transform_3, window_bounds = array<i64: 128, 128>}, {pipeline_mode = #tpu.pipeline_mode<synchronous>, transform_indices = @transform_4, window_bounds = array<i64: 128, 128>}, {pipeline_mode = #tpu.pipeline_mode<synchronous>, transform_indices = @transform_5, window_bounds = array<i64: 1, 128>}, {pipeline_mode = #tpu.pipeline_mode<synchronous>, transform_indices = @transform_6, window_bounds = array<i64: 1, 128>}, {pipeline_mode = #tpu.pipeline_mode<synchronous>, transform_indices = @transform_7, window_bounds = array<i64: 1, 128>}, {pipeline_mode = #tpu.pipeline_mode<synchronous>, transform_indices = @transform_8, window_bounds = array<i64: 1, 128>}, {transform_indices = @transform_9, window_bounds = array<i64: 128, 128>}]} {
    %c0 = arith.constant 0 : index
    %c0_0 = arith.constant 0 : index
    %0 = vector.load %arg1[%c0, %c0_0] : memref<256x128xf32, #tpu.memory_space<vmem>>, vector<256x128xf32>
    %c0_1 = arith.constant 0 : index
    %c0_2 = arith.constant 0 : index
    %1 = vector.load %arg3[%c0_1, %c0_2] : memref<128x128xf32, #tpu.memory_space<vmem>>, vector<128x128xf32>
    %cst = arith.constant dense<0.000000e+00> : vector<256x128xf32>
    %2 = tpu.matmul %0, %1, %cst {dimension_numbers = #tpu.dot_dimension_numbers<[1], [1], [0], [0], [0, 0, 1, 0], [], []>} : vector<256x128xf32>, vector<128x128xf32>, vector<256x128xf32> -> vector<256x128xf32>
    %c0_3 = arith.constant 0 : index
    %c0_4 = arith.constant 0 : index
    %3 = vector.load %arg7[%c0_3, %c0_4] : memref<1x128xf32, #tpu.memory_space<vmem>>, vector<1x128xf32>
    %4 = vector.broadcast %3 : vector<1x128xf32> to vector<256x128xf32>
    %5 = arith.addf %2, %4 : vector<256x128xf32>
    %c0_5 = arith.constant 0 : index
    %c0_6 = arith.constant 0 : index
    %6 = vector.load %arg4[%c0_5, %c0_6] : memref<128x128xf32, #tpu.memory_space<vmem>>, vector<128x128xf32>
    %cst_7 = arith.constant dense<0.000000e+00> : vector<256x128xf32>
    %7 = tpu.matmul %0, %6, %cst_7 {dimension_numbers = #tpu.dot_dimension_numbers<[1], [1], [0], [0], [0, 0, 1, 0], [], []>} : vector<256x128xf32>, vector<128x128xf32>, vector<256x128xf32> -> vector<256x128xf32>
    %c0_8 = arith.constant 0 : index
    %c0_9 = arith.constant 0 : index
    %8 = vector.load %arg8[%c0_8, %c0_9] : memref<1x128xf32, #tpu.memory_space<vmem>>, vector<1x128xf32>
    %9 = vector.broadcast %8 : vector<1x128xf32> to vector<256x128xf32>
    %10 = arith.addf %7, %9 : vector<256x128xf32>
    %c128_i32 = arith.constant 128 : i32
    %11 = arith.muli %arg0, %c128_i32 : i32
    %12 = tpu.assume_multiple %11, 128 : i32
    %13 = arith.index_cast %12 : i32 to index
    %c0_10 = arith.constant 0 : index
    %14 = vector.load %arg1[%13, %c0_10] : memref<256x128xf32, #tpu.memory_space<vmem>>, vector<128x128xf32>
    %c0_11 = arith.constant 0 : index
    %c0_12 = arith.constant 0 : index
    %15 = vector.load %arg2[%c0_11, %c0_12] : memref<128x128xf32, #tpu.memory_space<vmem>>, vector<128x128xf32>
    %cst_13 = arith.constant dense<0.000000e+00> : vector<128x128xf32>
    %16 = tpu.matmul %14, %15, %cst_13 {dimension_numbers = #tpu.dot_dimension_numbers<[1], [1], [0], [0], [0, 0, 1, 0], [], []>} : vector<128x128xf32>, vector<128x128xf32>, vector<128x128xf32> -> vector<128x128xf32>
    %c0_14 = arith.constant 0 : index
    %c0_15 = arith.constant 0 : index
    %17 = vector.load %arg6[%c0_14, %c0_15] : memref<1x128xf32, #tpu.memory_space<vmem>>, vector<1x128xf32>
    %18 = vector.broadcast %17 : vector<1x128xf32> to vector<128x128xf32>
    %19 = arith.addf %16, %18 : vector<128x128xf32>
    %cst_16 = arith.constant 0.0883883461 : f32
    %20 = vector.broadcast %cst_16 : f32 to vector<128x128xf32>
    %21 = arith.mulf %19, %20 : vector<128x128xf32>
    %cst_17 = arith.constant dense<0.000000e+00> : vector<128x256xf32>
    %22 = tpu.matmul %21, %5, %cst_17 {dimension_numbers = #tpu.dot_dimension_numbers<[1], [1], [0], [0], [0, 0, 1, 0], [], []>} : vector<128x128xf32>, vector<256x128xf32>, vector<128x256xf32> -> vector<128x256xf32>
    %cst_18 = arith.constant dense<0xFF800000> : vector<128xf32>
    %23 = vector.multi_reduction <maximumf>, %22, %cst_18 [1] : vector<128x256xf32> to vector<128xf32>
    %24 = vector.shape_cast %23 : vector<128xf32> to vector<128x1xf32>
    %25 = vector.broadcast %24 : vector<128x1xf32> to vector<128x256xf32>
    %26 = arith.subf %22, %25 : vector<128x256xf32>
    %27 = math.exp %26 : vector<128x256xf32>
    %cst_19 = arith.constant dense<0.000000e+00> : vector<128xf32>
    %28 = vector.multi_reduction <add>, %27, %cst_19 [1] : vector<128x256xf32> to vector<128xf32>
    %29 = vector.shape_cast %28 : vector<128xf32> to vector<128x1xf32>
    %cst_20 = arith.constant dense<0.000000e+00> : vector<128x128xf32>
    %30 = tpu.matmul %27, %10, %cst_20 {dimension_numbers = #tpu.dot_dimension_numbers<[1], [0], [0], [1], [0, 0, 1, 1], [], []>} : vector<128x256xf32>, vector<256x128xf32>, vector<128x128xf32> -> vector<128x128xf32>
    %cst_21 = arith.constant 1.000000e+00 : f32
    %31 = vector.broadcast %cst_21 : f32 to vector<128x1xf32>
    %32 = arith.divf %31, %29 : vector<128x1xf32>
    %33 = vector.broadcast %32 : vector<128x1xf32> to vector<128x128xf32>
    %34 = arith.mulf %30, %33 : vector<128x128xf32>
    %35 = arith.addf %34, %34 : vector<128x128xf32>
    %c0_22 = arith.constant 0 : index
    %c0_23 = arith.constant 0 : index
    %36 = vector.load %arg5[%c0_22, %c0_23] : memref<128x128xf32, #tpu.memory_space<vmem>>, vector<128x128xf32>
    %cst_24 = arith.constant dense<0.000000e+00> : vector<128x128xf32>
    %37 = tpu.matmul %35, %36, %cst_24 {dimension_numbers = #tpu.dot_dimension_numbers<[1], [1], [0], [0], [0, 0, 1, 0], [], []>} : vector<128x128xf32>, vector<128x128xf32>, vector<128x128xf32> -> vector<128x128xf32>
    %c0_25 = arith.constant 0 : index
    %c0_26 = arith.constant 0 : index
    %38 = vector.load %arg9[%c0_25, %c0_26] : memref<1x128xf32, #tpu.memory_space<vmem>>, vector<1x128xf32>
    %39 = vector.broadcast %38 : vector<1x128xf32> to vector<128x128xf32>
    %40 = arith.addf %37, %39 : vector<128x128xf32>
    %c0_27 = arith.constant 0 : index
    %c0_28 = arith.constant 0 : index
    %41 = vector.load %arg10[%c0_27, %c0_28] : memref<128x128xf32, #tpu.memory_space<vmem>>, vector<128x128xf32>
    tpu.vector_store %arg10[%c0_27, %c0_28], %40 {strides = array<i32>} : memref<128x128xf32, #tpu.memory_space<vmem>>, vector<128x128xf32>,
    return
  }
  func.func @transform_0(%arg0: i32) -> (i32, i32) {
    %c0_i32 = arith.constant 0 : i32
    %c0_i32_0 = arith.constant 0 : i32
    %c0_i32_1 = arith.constant 0 : i32
    return %c0_i32, %c0_i32_0 : i32, i32
  }
  func.func @transform_1(%arg0: i32) -> (i32, i32) {
    %c0_i32 = arith.constant 0 : i32
    %c0_i32_0 = arith.constant 0 : i32
    %c0_i32_1 = arith.constant 0 : i32
    return %c0_i32, %c0_i32_0 : i32, i32
  }
  func.func @transform_2(%arg0: i32) -> (i32, i32) {
    %c0_i32 = arith.constant 0 : i32
    %c0_i32_0 = arith.constant 0 : i32
    %c0_i32_1 = arith.constant 0 : i32
    return %c0_i32, %c0_i32_0 : i32, i32
  }
  func.func @transform_3(%arg0: i32) -> (i32, i32) {
    %c0_i32 = arith.constant 0 : i32
    %c0_i32_0 = arith.constant 0 : i32
    %c0_i32_1 = arith.constant 0 : i32
    return %c0_i32, %c0_i32_0 : i32, i32
  }
  func.func @transform_4(%arg0: i32) -> (i32, i32) {
    %c0_i32 = arith.constant 0 : i32
    %c0_i32_0 = arith.constant 0 : i32
    %c0_i32_1 = arith.constant 0 : i32
    return %c0_i32, %c0_i32_0 : i32, i32
  }
  func.func @transform_5(%arg0: i32) -> (i32, i32) {
    %c0_i32 = arith.constant 0 : i32
    %c0_i32_0 = arith.constant 0 : i32
    %c0_i32_1 = arith.constant 0 : i32
    return %c0_i32, %c0_i32_0 : i32, i32
  }
  func.func @transform_6(%arg0: i32) -> (i32, i32) {
    %c0_i32 = arith.constant 0 : i32
    %c0_i32_0 = arith.constant 0 : i32
    %c0_i32_1 = arith.constant 0 : i32
    return %c0_i32, %c0_i32_0 : i32, i32
  }
  func.func @transform_7(%arg0: i32) -> (i32, i32) {
    %c0_i32 = arith.constant 0 : i32
    %c0_i32_0 = arith.constant 0 : i32
    %c0_i32_1 = arith.constant 0 : i32
    return %c0_i32, %c0_i32_0 : i32, i32
  }
  func.func @transform_8(%arg0: i32) -> (i32, i32) {
    %c0_i32 = arith.constant 0 : i32
    %c0_i32_0 = arith.constant 0 : i32
    %c0_i32_1 = arith.constant 0 : i32
    return %c0_i32, %c0_i32_0 : i32, i32
  }
  func.func @transform_9(%arg0: i32) -> (i32, i32) {
    %c0_i32 = arith.constant 0 : i32
    %c0_i32_0 = arith.constant 0 : i32
    return %arg0, %c0_i32 : i32, i32
  }
}

</mosaic_0001>

<bundles_post_ra>
// kernel: dual_chunk_attention_forward.1
= control target key start
LH: loop header
LB: loop body
LE: loop exit
PB: predicated region body
PF: predicated region fallthrough
CT: control target
= control target key end

     0   :  { %s3613_s0 = inlined_call_operand.hbm [shape: f32[256,128], index: 0, kind: input, shape index: {}]   ;;  %s3614_s1 = inlined_call_operand.hbm [shape: f32[128,128], index: 1, kind: input, shape index: {}]   ;;  %s3615_s2 = inlined_call_operand.hbm [shape: f32[128,128], index: 2, kind: input, shape index: {}]   ;;  %s3616_s3 = inlined_call_operand.hbm [shape: f32[128,128], index: 3, kind: input, shape index: {}]   ;;  %s3617_s4 = inlined_call_operand.hbm [shape: f32[128,128], index: 4, kind: input, shape index: {}]   ;;  %s3618_s5 = inlined_call_operand.vmem [shape: f32[1,128], index: 5, kind: input, shape index: {}]   ;;  %s3619_s6 = inlined_call_operand.vmem [shape: f32[1,128], index: 6, kind: input, shape index: {}]   ;;  %s3620_s7 = inlined_call_operand.vmem [shape: f32[1,128], index: 7, kind: input, shape index: {}]   ;;  %s3621_s8 = inlined_call_operand.vmem [shape: f32[1,128], index: 8, kind: input, shape index: {}]   ;;  %s3622_s9 = inlined_call_operand.hbm [shape: f32[256,128], index: 9, kind: output, shape index: {}]  }
   0x1   :  { %3624 = sst [smem:[#allocation17_spill]] %s3614_s1 }
   0x2   :  { %14 = vsyncpa [#allocation3], 0 }
   0x3   :  { %15 = vsyncpa [#allocation6], 0 }
   0x4   :  { %16 = vsyncpa [#allocation9], 0 }
   0x5   :  { %17 = vsyncpa [#allocation4], 0 }
   0x6   :  { %19 = vsyncpa [#allocation4 + $0x1], 0  ;;  %s3032_s30 = smov 0   ;;  %s3034_s10 = smov 0  }
   0x7   :  { %s3036_s11 = smov 0   ;;  %s3038_s12 = smov 0  }
   0x8 LB: > { %s3053_s13 = sadd.s32 4294967295, %s2970_s12   ;;  %s1977_s14 = sadd.s32 4294967294, %s2970_s12   ;;  %s2970_s12 = sphi %s3038_s12, %s3642_s12   ;;  %s2966_s11 = sphi %s3036_s11, %s3641_s11   ;;  %s2962_s10 = sphi %s3034_s10, %s3640_s10   ;;  %s2958_s30 = sphi %s3032_s30, %s3639_s30  }
   0x9   : > { %s3057_s15 = sadd.s32 1, %s2970_s12   ;;  %s221_s16 = sadd.s32 1, %s2966_s11 }
   0xa   : > { %s218_s17 = ssub.s32 %s2970_s12, %s3057_s15  ;;  %p231_p0 = scmp.ne.s32.totalorder %s2966_s11, %s2962_s10 }
   0xb   : > { %p219_p1 = scmp.eq.s32.totalorder %s218_s17, 0  ;;  %p232_p2 = scmp.eq.s32.totalorder %s3053_s13, 1 }
   0xc   : > { %p237_p3 = scmp.ne.s32.totalorder %s2962_s10, %s2958_s30  ;;  %p238_p4 = scmp.eq.s32.totalorder %s1977_s14, 1 }
   0xd   : > { %s3068_s18 = scalar_select %p219_p1, %s2966_s11, %s221_s16  }
   0xe   : > { %p3070_p5 = por %p232_p2, %p231_p0  ;;  %p3074_p6 = por %p238_p4, %p237_p3 }
   0xf   : > { %3625 = sst [smem:[#allocation16_spill]] %s3068_s18  ;;  %p1978_p7 = scmp.ge.s32.totalorder %s2970_s12, 1 }
  0x10   : > { %p245_p8 = scmp.lt.s32.totalorder %s2970_s12, 3  ;;  %p3623_p9 = scmp.eq.s32.totalorder %s3053_s13, 0 }
  0x11   : > { %s2972_s22 = smov [#allocation5]   ;;  %s2973_s25 = smov [#allocation8]  }
  0x12   : > { %p3081_p10 = pnand %p1978_p7, %p245_p8  ;;  %s270_s23 = sshll.u32 %s2972_s22, 4  ;;  %s271_s23 = int_to_ptr.vmem [resolvable:$true] %s270_s23 }
  0x13   : > { %s296_s26 = sshll.u32 %s2973_s25, 4  ;;  %s2974_s27 = smov [#allocation2]   ;;  %s297_s26 = int_to_ptr.vmem [resolvable:$true] %s296_s26 }
  0x14   : > { %p2600_p11 = pneg %p3081_p10  ;;  %s257_s28 = sshll.u32 %s2974_s27, 4  ;;  %s258_s28 = int_to_ptr.vmem [resolvable:$true] %s257_s28 }
  0x15   : > { %s2779_s14 = scalar_lea.vmem %s271_s23, 2048  ;;  %p2787_p3 = scmp.lt.s32.totalorder %s271_s23, %s271_s23 }
  0x16   : > { %p3089_p12 = pnand %p3623_p9, %p2600_p11  ;;  %p2780_p0 = scmp.ne.s32.totalorder %s271_s23, %s2779_s14 }
  0x17   : > { %p2788_p4 = scmp.lt.s32.totalorder %s2779_s14, %s2779_s14 }
  0x18   : > { %p3095_p13 = pneg %p3089_p12 }
  0x19   : > { %p2789_p7 = por %p2788_p4, %p2787_p3 }
  0x1a   : > { %p2782_p1 = pnand %p2780_p0, %p3095_p13 }
  0x1c   : > { %p2783_p2 = pneg %p2782_p1 }
  0x1e   : > { %p2790_p8 = pnand %p2789_p7, %p2783_p2 }
  0x20   : > { %2793 = shalt.err (!%p2790_p8)
}
  0x21   : > { %s2975_s16 = smov 128   ;;  %s2976_s17 = smov 8  }
  0x22   : > { %s3631_s1 = sld [smem:[#allocation17_spill]]  ;;  %s2805_s27 = scalar_lea.vmem %s297_s26, 2048 }
  0x23   : > { %p2806_p11 = scmp.ne.s32.totalorder %s297_s26, %s2805_s27  ;;  %p2813_p3 = scmp.lt.s32.totalorder %s297_s26, %s297_s26 }
  0x24   : > { %p2814_p2 = scmp.lt.s32.totalorder %s2805_s27, %s2805_s27 }
  0x25   : > { %p2808_p0 = pnand %p2806_p11, %p3095_p13 }
  0x26   : > { %p2815_p4 = por %p2814_p2, %p2813_p3 }
  0x27   : > { %p2809_p1 = pneg %p2808_p0 }
  0x28   : > { %2606 = dma.hbm_to_vmem [thread:$0]  (!%p3089_p12), %s3631_s1, 2048, %s271_s23, [#allocation6], %s2975_s16, %s2975_s16, %s2976_s17  }
  0x29   : > { %p2816_p7 = pnand %p2815_p4, %p2809_p1 }
  0x2b   : > { %2819 = shalt.err (!%p2816_p7)
}
  0x2c   : > { %2612 = dma.hbm_to_vmem [thread:$0]  (!%p3089_p12), %s3616_s3, 2048, %s297_s26, [#allocation9], %s2975_s16, %s2975_s16, %s2976_s17  }
  0x2d   : > { %s2831_s23 = scalar_lea.vmem %s258_s28, 4096  ;;  %p2839_p9 = scmp.lt.s32.totalorder %s258_s28, %s258_s28 }
  0x2e   : > { %p2832_p8 = scmp.ne.s32.totalorder %s258_s28, %s2831_s23  ;;  %p2840_p3 = scmp.lt.s32.totalorder %s2831_s23, %s2831_s23 }
  0x30   : > { %p2834_p11 = pnand %p2832_p8, %p3095_p13  ;;  %p2841_p1 = por %p2840_p3, %p2839_p9 }
  0x32   : > { %p2835_p0 = pneg %p2834_p11 }
  0x34   : > { %p2842_p2 = pnand %p2841_p1, %p2835_p0 }
  0x36   : > { %2845 = shalt.err (!%p2842_p2)
}
  0x37   : > { %2603 = dma.hbm_to_vmem [thread:$0]  (!%p3089_p12), %s3613_s0, 4096, %s258_s28, [#allocation3], %s2975_s16, %s2975_s16, %s2976_s17  }
  0x38   : > { %s2977_s26 = smov [#allocation7]   ;;  %s2978_s27 = smov [#allocation10]  }
  0x39   : > { %s283_s25 = sshll.u32 %s2977_s26, 4  ;;  %s309_s14 = sshll.u32 %s2978_s27, 4  ;;  %s284_s25 = int_to_ptr.vmem [resolvable:$true] %s283_s25  ;;  %s310_s14 = int_to_ptr.vmem [resolvable:$true] %s309_s14 }
  0x3a   : > { %s2857_s1 = scalar_lea.vmem %s284_s25, 2048  ;;  %p2865_p8 = scmp.lt.s32.totalorder %s284_s25, %s284_s25 }
  0x3b   : > { %p2858_p4 = scmp.ne.s32.totalorder %s284_s25, %s2857_s1  ;;  %p2866_p11 = scmp.lt.s32.totalorder %s2857_s1, %s2857_s1 }
  0x3d   : > { %p2860_p9 = pnand %p2858_p4, %p3095_p13  ;;  %p2867_p0 = por %p2866_p11, %p2865_p8 }
  0x3f   : > { %p2861_p7 = pneg %p2860_p9 }
  0x41   : > { %p2868_p3 = pnand %p2867_p0, %p2861_p7 }
  0x43   : > { %2871 = shalt.err (!%p2868_p3)
}
  0x44   : > { %2609 = dma.hbm_to_vmem [thread:$0]  (!%p3089_p12), %s3615_s2, 2048, %s284_s25, [#allocation6], %s2975_s16, %s2975_s16, %s2976_s17  }
  0x45   : > { %s2883_s22 = scalar_lea.vmem %s310_s14, 2048  ;;  %p2891_p9 = scmp.lt.s32.totalorder %s310_s14, %s310_s14 }
  0x46   : > { %p2884_p1 = scmp.ne.s32.totalorder %s310_s14, %s2883_s22  ;;  %p2892_p8 = scmp.lt.s32.totalorder %s2883_s22, %s2883_s22 }
  0x48   : > { %p2886_p2 = pnand %p2884_p1, %p3095_p13  ;;  %p2893_p7 = por %p2892_p8, %p2891_p9 }
  0x4a   : > { %p2887_p4 = pneg %p2886_p2 }
  0x4c   : > { %p2894_p11 = pnand %p2893_p7, %p2887_p4 }
  0x4e   : > { %2897 = shalt.err (!%p2894_p11)
}
  0x4f   : > { %2615 = dma.hbm_to_vmem [thread:$0]  (!%p3089_p12), %s3617_s4, 2048, %s310_s14, [#allocation9], %s2975_s16, %s2975_s16, %s2976_s17  }
  0x50   : > { %337 = sbr.rel (%p3081_p10) target bundleno = 1304 (0x518), region = 56  ;;  %p3632_p13 = scmp.eq.s32.totalorder (!%p3081_p10), %s3053_s13, 0 }
  0x55   : > { %2941 = dma.done.wait (%p3632_p13), [#allocation3], 4096   ;;  %p3633_p0 = pmov %p3632_p13 }
  0x57   : > { %2943 = vsyncadd (%p3633_p0), [#allocation3], 4294963200  ;;  %p3634_p3 = pmov %p3633_p0 }
  0x58   : > { %p3635_p1 = pmov %p3633_p0 }
  0x59   : > { %2945 = dma.done.wait (%p3634_p3), [#allocation6], 4096  }
  0x5a   : > { %2947 = vsyncadd (%p3635_p1), [#allocation6], 4294963200  ;;  %p3636_p2 = pmov %p3633_p0 }
  0x5b   : > { %p3637_p12 = pmov %p3633_p0 }
  0x5c   : > { %2949 = dma.done.wait (%p3636_p2), [#allocation9], 4096  }
  0x5d   : > { %2951 = vsyncadd (%p3637_p12), [#allocation9], 4294963200  ;;  %v432_v0 = vld [vmem:[#allocation7 + $0x78] sm:$0xff]  ;;  %v431_v1 = vld [vmem:[#allocation7 + $0x70] sm:$0xff]  ;;  %s1993_s21 = sshll.u32 %s3053_s13, 7  ;;  %s381_s14 = sand.u32 1, %s2962_s10  }
  0x5e   : > { %2306 = vmatprep.subr.mxu0 %v432_v0  ;;  %v430_v2 = vld [vmem:[#allocation7 + $0x68] sm:$0xff]  ;;  %v385_v3 = vld [vmem:[#allocation2] sm:$0xff]  ;;  %v428_v5 = vld [vmem:[#allocation7 + $0x58] sm:$0xff]  ;;  %s3164_s24 = scalar_lea.vmem [#allocation2], %s1993_s21  ;;  %s1990_s28 = sshll.u32 %s381_s14, 7 }
  0x5f   : > { %2307 = vmatpush3.xpose.msra.mxu0 %v432_v0  ;;  %2338 = vmatprep.mubr.f32.mxu0 %v385_v3  ;;  %v429_v4 = vld [vmem:[#allocation7 + $0x60] sm:$0xff]  ;;  %v427_v6 = vld [vmem:[#allocation7 + $0x50] sm:$0xff]  ;;  %v426_v7 = vld [vmem:[#allocation7 + $0x48] sm:$0xff]  ;;  %s3544_s1 = scalar_lea.vmem [#allocation11], %s1990_s28  ;;  %s2001_s18 = sshll.u32 %s3053_s13, 11 }
  0x60   : > { %2308 = vmatprep.subr.mxu0 %v431_v1  ;;  %2418 = vmatprep.mubr.f32.mxu1 %v385_v3  ;;  %v680_v8 = vld [vmem:[#allocation8 + $0x78] sm:$0xff]  ;;  %v679_v9 = vld [vmem:[#allocation8 + $0x70] sm:$0xff]  ;;  %v425_v10 = vld [vmem:[#allocation7 + $0x40] sm:$0xff]  ;;  %s1875_s21 = sshll.u32 %s3544_s1, 4  ;;  %s3565_s16 = scalar_lea.hbm %s3622_s9, %s2001_s18  ;;  %s3567_s21 = int_to_ptr.vmem [resolvable:$true] %s1875_s21 }
  0x61   : > { %2386 = vmatprep.subr.mxu1 %v680_v8  ;;  %v678_v11 = vld [vmem:[#allocation8 + $0x68] sm:$0xff]  ;;  %v424_v12 = vld [vmem:[#allocation7 + $0x38] sm:$0xff]  ;;  %v677_v13 = vld [vmem:[#allocation8 + $0x60] sm:$0xff]  ;;  %s3573_s17 = scalar_lea.sflag [#allocation4], %s381_s14  ;;  %s2898_s13 = scalar_lea.vmem %s3567_s21, 2048 }
  0x62   : > { %2387 = vmatpush3.xpose.msra.mxu1 %v680_v8  ;;  %v423_v14 = vld [vmem:[#allocation7 + $0x30] sm:$0xff]  ;;  %v676_v15 = vld [vmem:[#allocation8 + $0x58] sm:$0xff]  ;;  %v422_v16 = vld [vmem:[#allocation7 + $0x28] sm:$0xff]  ;;  %p2899_p10 = scmp.ne.s32.totalorder %s3567_s21, %s2898_s13  ;;  %s2979_s26 = smov [#allocation11]  }
  0x63   : > { %2309 = vmatpush3.xpose.msra.mxu0 %v431_v1  ;;  %2388 = vmatprep.subr.mxu1 %v679_v9  ;;  %v675_v17 = vld [vmem:[#allocation8 + $0x50] sm:$0xff]  ;;  %v421_v18 = vld [vmem:[#allocation7 + $0x20] sm:$0xff]  ;;  %v674_v19 = vld [vmem:[#allocation8 + $0x48] sm:$0xff]  ;;  %s2902_s25 = sshll.u32 %s2979_s26, 4  ;;  %s2903_s25 = int_to_ptr.vmem [resolvable:$false] %s2902_s25 }
  0x64   : > { %2310 = vmatprep.subr.mxu0 %v430_v2  ;;  %v420_v20 = vld [vmem:[#allocation7 + $0x18] sm:$0xff]  ;;  %v673_v21 = vld [vmem:[#allocation8 + $0x40] sm:$0xff]  ;;  %v419_v22 = vld [vmem:[#allocation7 + $0x10] sm:$0xff]  ;;  %p2900_p4 = pnand %p2899_p10, %p3070_p5  ;;  %s2904_s27 = scalar_lea.vmem %s2903_s25, 4096 }
  0x65   : > { %v672_v23 = vld [vmem:[#allocation8 + $0x38] sm:$0xff]  ;;  %v418_v24 = vld [vmem:[#allocation7 + $0x8] sm:$0xff]  ;;  %v671_v25 = vld [vmem:[#allocation8 + $0x30] sm:$0xff]  ;;  %p2905_p8 = scmp.lt.s32.totalorder %s3567_s21, %s2903_s25  ;;  %p2906_p7 = scmp.lt.s32.totalorder %s2904_s27, %s2898_s13 }
  0x66   : > { %2389 = vmatpush3.xpose.msra.mxu1 %v679_v9  ;;  %v417_v26 = vld [vmem:[#allocation7] sm:$0xff]  ;;  %v670_v27 = vld [vmem:[#allocation8 + $0x28] sm:$0xff]  ;;  %v946_v28 = vld [vmem:[#allocation5 + $0x78] sm:$0xff]  ;;  %p2901_p9 = pneg %p2900_p4 }
  0x67   : > { %2311 = vmatpush3.xpose.msra.mxu0 %v430_v2  ;;  %2390 = vmatprep.subr.mxu1 %v678_v11  ;;  %v669_v29 = vld [vmem:[#allocation8 + $0x20] sm:$0xff]  ;;  %v386_v30 = vld [vmem:[#allocation2 + $0x8] sm:$0xff]  ;;  %v387_v31 = vld [vmem:[#allocation2 + $0x10] sm:$0xff]  ;;  %p2907_p11 = por %p2906_p7, %p2905_p8 }
  0x68   : > { %2312 = vmatprep.subr.mxu0 %v429_v4  ;;  %v945_v32 = vld [vmem:[#allocation5 + $0x70] sm:$0xff]  ;;  %v668_v33 = vld [vmem:[#allocation8 + $0x18] sm:$0xff]  ;;  %v389_v35 = vld [vmem:[#allocation2 + $0x20] sm:$0xff] }
  0x69   : > { %v388_v34 = vld [vmem:[#allocation2 + $0x18] sm:$0xff]  ;;  %v944_v36 = vld [vmem:[#allocation5 + $0x68] sm:$0xff]  ;;  %v667_v37 = vld [vmem:[#allocation8 + $0x10] sm:$0xff]  ;;  %p2908_p13 = pnand %p2907_p11, %p2901_p9 }
  0x6a   : > { %2391 = vmatpush3.xpose.msra.mxu1 %v678_v11  ;;  %v390_v38 = vld [vmem:[#allocation2 + $0x28] sm:$0xff]  ;;  %v391_v39 = vld [vmem:[#allocation2 + $0x30] sm:$0xff]  ;;  %v943_v40 = vld [vmem:[#allocation5 + $0x60] sm:$0xff] }
  0x6b   : > { %2313 = vmatpush3.xpose.msra.mxu0 %v429_v4  ;;  %2392 = vmatprep.subr.mxu1 %v677_v13  ;;  %v666_v41 = vld [vmem:[#allocation8 + $0x8] sm:$0xff]  ;;  %v392_v42 = vld [vmem:[#allocation2 + $0x38] sm:$0xff]  ;;  %v393_v43 = vld [vmem:[#allocation2 + $0x40] sm:$0xff] }
  0x6c   : > { %2314 = vmatprep.subr.mxu0 %v428_v5  ;;  %v942_v44 = vld [vmem:[#allocation5 + $0x58] sm:$0xff]  ;;  %v665_v45 = vld [vmem:[#allocation8] sm:$0xff]  ;;  %v394_v46 = vld [vmem:[#allocation2 + $0x48] sm:$0xff] }
  0x6d   : > { %v395_v47 = vld [vmem:[#allocation2 + $0x50] sm:$0xff]  ;;  %v396_v49 = vld [vmem:[#allocation2 + $0x58] sm:$0xff]  ;;  %v397_v50 = vld [vmem:[#allocation2 + $0x60] sm:$0xff] }
  0x6e   : > { %2393 = vmatpush3.xpose.msra.mxu1 %v677_v13  ;;  %v941_v48 = vld [vmem:[#allocation5 + $0x50] sm:$0xff]  ;;  %v940_v51 = vld [vmem:[#allocation5 + $0x48] sm:$0xff]  ;;  %v939_v54 = vld [vmem:[#allocation5 + $0x40] sm:$0xff] }
  0x6f   : > { %2315 = vmatpush3.xpose.msra.mxu0 %v428_v5  ;;  %2394 = vmatprep.subr.mxu1 %v676_v15  ;;  %v398_v52 = vld [vmem:[#allocation2 + $0x68] sm:$0xff]  ;;  %v399_v53 = vld [vmem:[#allocation2 + $0x70] sm:$0xff]  ;;  %v400_v55 = vld [vmem:[#allocation2 + $0x78] sm:$0xff] }
  0x70   : > { %2316 = vmatprep.subr.mxu0 %v427_v6  ;;  %v401_v56 = vld [vmem:[#allocation2 + $0x80] sm:$0xff]  ;;  %v938_v57 = vld [vmem:[#allocation5 + $0x38] sm:$0xff]  ;;  %v402_v58 = vld [vmem:[#allocation2 + $0x88] sm:$0xff] }
  0x71   : > { %v403_v59 = vld [vmem:[#allocation2 + $0x90] sm:$0xff]  ;;  %v404_v61 = vld [vmem:[#allocation2 + $0x98] sm:$0xff]  ;;  %v405_v62 = vld [vmem:[#allocation2 + $0xa0] sm:$0xff] }
  0x72   : > { %2395 = vmatpush3.xpose.msra.mxu1 %v676_v15  ;;  %v937_v60 = vld [vmem:[#allocation5 + $0x30] sm:$0xff]  ;;  %v936_v63 = vld [vmem:[#allocation5 + $0x28] sm:$0xff]  ;;  %v935_v2 = vld [vmem:[#allocation5 + $0x20] sm:$0xff] }
  0x73   : > { %2317 = vmatpush3.xpose.msra.mxu0 %v427_v6  ;;  %2396 = vmatprep.subr.mxu1 %v675_v17  ;;  %v406_v0 = vld [vmem:[#allocation2 + $0xa8] sm:$0xff]  ;;  %v407_v1 = vld [vmem:[#allocation2 + $0xb0] sm:$0xff]  ;;  %v408_v3 = vld [vmem:[#allocation2 + $0xb8] sm:$0xff] }
  0x74   : > { %2318 = vmatprep.subr.mxu0 %v426_v7  ;;  %v409_v4 = vld [vmem:[#allocation2 + $0xc0] sm:$0xff]  ;;  %v934_v5 = vld [vmem:[#allocation5 + $0x18] sm:$0xff]  ;;  %v410_v6 = vld [vmem:[#allocation2 + $0xc8] sm:$0xff] }
  0x75   : > { %v933_v8 = vld [vmem:[#allocation5 + $0x10] sm:$0xff]  ;;  %v412_v9 = vld [vmem:[#allocation2 + $0xd8] sm:$0xff]  ;;  %v932_v11 = vld [vmem:[#allocation5 + $0x8] sm:$0xff] }
  0x76   : > { %2397 = vmatpush3.xpose.msra.mxu1 %v675_v17  ;;  %v415_v13 = vld [vmem:[#allocation2 + $0xf0] sm:$0xff]  ;;  %v416_v15 = vld [vmem:[#allocation2 + $0xf8] sm:$0xff]  ;;  %v916_v17 = vld [vmem:[%s3164_s24 + $0x8] sm:$0xff] }
  0x77   : > { %2319 = vmatpush3.xpose.msra.mxu0 %v426_v7  ;;  %2398 = vmatprep.subr.mxu1 %v674_v19  ;;  %v411_v7 = vld [vmem:[#allocation2 + $0xd0] sm:$0xff] }
  0x78   : > { %2320 = vmatprep.subr.mxu0 %v425_v10 }
  0x7a   : > { %2399 = vmatpush3.xpose.msra.mxu1 %v674_v19  ;;  %v918_v19 = vld [vmem:[%s3164_s24 + $0x18] sm:$0xff] }
  0x7b   : > { %2321 = vmatpush3.xpose.msra.mxu0 %v425_v10  ;;  %2400 = vmatprep.subr.mxu1 %v673_v21  ;;  %v413_v10 = vld [vmem:[#allocation2 + $0xe0] sm:$0xff] }
  0x7c   : > { %2322 = vmatprep.subr.mxu0 %v424_v12 }
  0x7e   : > { %2401 = vmatpush3.xpose.msra.mxu1 %v673_v21  ;;  %v920_v21 = vld [vmem:[%s3164_s24 + $0x28] sm:$0xff] }
  0x7f   : > { %2323 = vmatpush3.xpose.msra.mxu0 %v424_v12  ;;  %2402 = vmatprep.subr.mxu1 %v672_v23  ;;  %v414_v12 = vld [vmem:[#allocation2 + $0xe8] sm:$0xff] }
  0x80   : > { %2324 = vmatprep.subr.mxu0 %v423_v14 }
  0x82   : > { %2403 = vmatpush3.xpose.msra.mxu1 %v672_v23  ;;  %v922_v23 = vld [vmem:[%s3164_s24 + $0x38] sm:$0xff] }
  0x83   : > { %2325 = vmatpush3.xpose.msra.mxu0 %v423_v14  ;;  %2404 = vmatprep.subr.mxu1 %v671_v25  ;;  %v931_v14 = vld [vmem:[#allocation5] sm:$0xff] }
  0x84   : > { %2326 = vmatprep.subr.mxu0 %v422_v16 }
  0x86   : > { %2405 = vmatpush3.xpose.msra.mxu1 %v671_v25  ;;  %v924_v25 = vld [vmem:[%s3164_s24 + $0x48] sm:$0xff] }
  0x87   : > { %2327 = vmatpush3.xpose.msra.mxu0 %v422_v16  ;;  %2406 = vmatprep.subr.mxu1 %v670_v27  ;;  %v915_v16 = vld [vmem:[%s3164_s24] sm:$0xff] }
  0x88   : > { %2328 = vmatprep.subr.mxu0 %v421_v18 }
  0x8a   : > { %2407 = vmatpush3.xpose.msra.mxu1 %v670_v27  ;;  %v926_v27 = vld [vmem:[%s3164_s24 + $0x58] sm:$0xff] }
  0x8b   : > { %2329 = vmatpush3.xpose.msra.mxu0 %v421_v18  ;;  %2408 = vmatprep.subr.mxu1 %v669_v29  ;;  %v917_v18 = vld [vmem:[%s3164_s24 + $0x10] sm:$0xff] }
  0x8c   : > { %2330 = vmatprep.subr.mxu0 %v420_v20 }
  0x8e   : > { %2409 = vmatpush3.xpose.msra.mxu1 %v669_v29  ;;  %v928_v29 = vld [vmem:[%s3164_s24 + $0x68] sm:$0xff] }
  0x8f   : > { %2331 = vmatpush3.xpose.msra.mxu0 %v420_v20  ;;  %2410 = vmatprep.subr.mxu1 %v668_v33  ;;  %v919_v20 = vld [vmem:[%s3164_s24 + $0x20] sm:$0xff] }
  0x90   : > { %2332 = vmatprep.subr.mxu0 %v419_v22 }
  0x92   : > { %2411 = vmatpush3.xpose.msra.mxu1 %v668_v33 }
  0x93   : > { %2333 = vmatpush3.xpose.msra.mxu0 %v419_v22  ;;  %2412 = vmatprep.subr.mxu1 %v667_v37  ;;  %v921_v22 = vld [vmem:[%s3164_s24 + $0x30] sm:$0xff] }
  0x94   : > { %2334 = vmatprep.subr.mxu0 %v418_v24 }
  0x96   : > { %2413 = vmatpush3.xpose.msra.mxu1 %v667_v37 }
  0x97   : > { %2335 = vmatpush3.xpose.msra.mxu0 %v418_v24  ;;  %2414 = vmatprep.subr.mxu1 %v666_v41  ;;  %v923_v24 = vld [vmem:[%s3164_s24 + $0x40] sm:$0xff] }
  0x98   : > { %2336 = vmatprep.subr.mxu0 %v417_v26 }
  0x9a   : > { %2415 = vmatpush3.xpose.msra.mxu1 %v666_v41 }
  0x9b   : > { %2337 = vmatpush3.xpose.msra.mxu0 %v417_v26  ;;  %2416 = vmatprep.subr.mxu1 %v665_v45  ;;  %v925_v26 = vld [vmem:[%s3164_s24 + $0x50] sm:$0xff] }
  0x9c   : > { %2466 = vmatprep.subr.mxu0 %v946_v28 }
  0x9e   : > { %2339 = vmatmul.mubr.f32.vlgmr.msra.gmra.mxu0 %v386_v30  ;;  %2417 = vmatpush3.xpose.msra.mxu1 %v665_v45 }
  0x9f   : > { %2341 = vmatprep.mubr.f32.mxu0 %v387_v31  ;;  %2467 = vmatpush3.xpose.msra.mxu0 %v946_v28  ;;  %v927_v28 = vld [vmem:[%s3164_s24 + $0x60] sm:$0xff] }
  0xa0   : > { %2468 = vmatprep.subr.mxu0 %v945_v32 }
  0xa1   : > { %2419 = vmatmul.mubr.f32.vlgmr.msra.gmra.mxu1 %v386_v30  ;;  %v929_v30 = vld [vmem:[%s3164_s24 + $0x70] sm:$0xff] }
  0xa2   : > { %2342 = vmatmul.mubr.f32.gmra.mxu0 %v388_v34  ;;  %2421 = vmatprep.mubr.f32.mxu1 %v387_v31  ;;  %v930_v31 = vld [vmem:[%s3164_s24 + $0x78] sm:$0xff] }
  0xa3   : > { %2344 = vmatprep.mubr.f32.mxu0 %v389_v35  ;;  %2469 = vmatpush3.xpose.msra.mxu0 %v945_v32 }
  0xa4   : > { %2470 = vmatprep.subr.mxu0 %v944_v36 }
  0xa5   : > { %2422 = vmatmul.mubr.f32.gmra.mxu1 %v388_v34 }
  0xa6   : > { %2345 = vmatmul.mubr.f32.gmra.mxu0 %v390_v38  ;;  %2424 = vmatprep.mubr.f32.mxu1 %v389_v35 }
  0xa7   : > { %2347 = vmatprep.mubr.f32.mxu0 %v391_v39  ;;  %2471 = vmatpush3.xpose.msra.mxu0 %v944_v36 }
  0xa8   : > { %2472 = vmatprep.subr.mxu0 %v943_v40 }
  0xa9   : > { %2425 = vmatmul.mubr.f32.gmra.mxu1 %v390_v38 }
  0xaa   : > { %2348 = vmatmul.mubr.f32.gmra.mxu0 %v392_v42  ;;  %2427 = vmatprep.mubr.f32.mxu1 %v391_v39 }
  0xab   : > { %2350 = vmatprep.mubr.f32.mxu0 %v393_v43  ;;  %2473 = vmatpush3.xpose.msra.mxu0 %v943_v40 }
  0xac   : > { %2474 = vmatprep.subr.mxu0 %v942_v44 }
  0xad   : > { %2428 = vmatmul.mubr.f32.gmra.mxu1 %v392_v42 }
  0xae   : > { %2351 = vmatmul.mubr.f32.gmra.mxu0 %v394_v46  ;;  %2430 = vmatprep.mubr.f32.mxu1 %v393_v43 }
  0xaf   : > { %2353 = vmatprep.mubr.f32.mxu0 %v395_v47  ;;  %2475 = vmatpush3.xpose.msra.mxu0 %v942_v44 }
  0xb0   : > { %2476 = vmatprep.subr.mxu0 %v941_v48 }
  0xb1   : > { %2431 = vmatmul.mubr.f32.gmra.mxu1 %v394_v46 }
  0xb2   : > { %2354 = vmatmul.mubr.f32.gmra.mxu0 %v396_v49  ;;  %2433 = vmatprep.mubr.f32.mxu1 %v395_v47 }
  0xb3   : > { %2356 = vmatprep.mubr.f32.mxu0 %v397_v50  ;;  %2477 = vmatpush3.xpose.msra.mxu0 %v941_v48 }
  0xb4   : > { %2478 = vmatprep.subr.mxu0 %v940_v51 }
  0xb5   : > { %2434 = vmatmul.mubr.f32.gmra.mxu1 %v396_v49 }
  0xb6   : > { %2357 = vmatmul.mubr.f32.gmra.mxu0 %v398_v52  ;;  %2436 = vmatprep.mubr.f32.mxu1 %v397_v50 }
  0xb7   : > { %2359 = vmatprep.mubr.f32.mxu0 %v399_v53  ;;  %2479 = vmatpush3.xpose.msra.mxu0 %v940_v51 }
  0xb8   : > { %2480 = vmatprep.subr.mxu0 %v939_v54 }
  0xb9   : > { %2437 = vmatmul.mubr.f32.gmra.mxu1 %v398_v52 }
  0xba   : > { %2360 = vmatmul.mubr.f32.gmra.mxu0 %v400_v55  ;;  %2439 = vmatprep.mubr.f32.mxu1 %v399_v53 }
  0xbb   : > { %2362 = vmatprep.mubr.f32.mxu0 %v401_v56  ;;  %2481 = vmatpush3.xpose.msra.mxu0 %v939_v54 }
  0xbc   : > { %2482 = vmatprep.subr.mxu0 %v938_v57 }
  0xbd   : > { %2440 = vmatmul.mubr.f32.gmra.mxu1 %v400_v55 }
  0xbe   : > { %2363 = vmatmul.mubr.f32.gmra.mxu0 %v402_v58  ;;  %2442 = vmatprep.mubr.f32.mxu1 %v401_v56 }
  0xbf   : > { %2365 = vmatprep.mubr.f32.mxu0 %v403_v59  ;;  %2483 = vmatpush3.xpose.msra.mxu0 %v938_v57 }
  0xc0   : > { %2484 = vmatprep.subr.mxu0 %v937_v60 }
  0xc1   : > { %2443 = vmatmul.mubr.f32.gmra.mxu1 %v402_v58 }
  0xc2   : > { %2366 = vmatmul.mubr.f32.gmra.mxu0 %v404_v61  ;;  %2445 = vmatprep.mubr.f32.mxu1 %v403_v59 }
  0xc3   : > { %2368 = vmatprep.mubr.f32.mxu0 %v405_v62  ;;  %2485 = vmatpush3.xpose.msra.mxu0 %v937_v60 }
  0xc4   : > { %2486 = vmatprep.subr.mxu0 %v936_v63 }
  0xc5   : > { %2446 = vmatmul.mubr.f32.gmra.mxu1 %v404_v61 }
  0xc6   : > { %2369 = vmatmul.mubr.f32.gmra.mxu0 %v406_v0  ;;  %2448 = vmatprep.mubr.f32.mxu1 %v405_v62 }
  0xc7   : > { %2371 = vmatprep.mubr.f32.mxu0 %v407_v1  ;;  %2487 = vmatpush3.xpose.msra.mxu0 %v936_v63 }
  0xc8   : > { %2488 = vmatprep.subr.mxu0 %v935_v2 }
  0xc9   : > { %2449 = vmatmul.mubr.f32.gmra.mxu1 %v406_v0 }
  0xca   : > { %2372 = vmatmul.mubr.f32.gmra.mxu0 %v408_v3  ;;  %2451 = vmatprep.mubr.f32.mxu1 %v407_v1 }
  0xcb   : > { %2374 = vmatprep.mubr.f32.mxu0 %v409_v4  ;;  %2489 = vmatpush3.xpose.msra.mxu0 %v935_v2 }
  0xcc   : > { %2490 = vmatprep.subr.mxu0 %v934_v5 }
  0xcd   : > { %2452 = vmatmul.mubr.f32.gmra.mxu1 %v408_v3 }
  0xce   : > { %2375 = vmatmul.mubr.f32.gmra.mxu0 %v410_v6  ;;  %2454 = vmatprep.mubr.f32.mxu1 %v409_v4 }
  0xcf   : > { %2377 = vmatprep.mubr.f32.mxu0 %v411_v7  ;;  %2491 = vmatpush3.xpose.msra.mxu0 %v934_v5 }
  0xd0   : > { %2492 = vmatprep.subr.mxu0 %v933_v8 }
  0xd1   : > { %2455 = vmatmul.mubr.f32.gmra.mxu1 %v410_v6 }
  0xd2   : > { %2378 = vmatmul.mubr.f32.gmra.mxu0 %v412_v9  ;;  %2457 = vmatprep.mubr.f32.mxu1 %v411_v7 }
  0xd3   : > { %2380 = vmatprep.mubr.f32.mxu0 %v413_v10  ;;  %2493 = vmatpush3.xpose.msra.mxu0 %v933_v8 }
  0xd4   : > { %2494 = vmatprep.subr.mxu0 %v932_v11 }
  0xd5   : > { %2458 = vmatmul.mubr.f32.gmra.mxu1 %v412_v9 }
  0xd6   : > { %2381 = vmatmul.mubr.f32.gmra.mxu0 %v414_v12  ;;  %2460 = vmatprep.mubr.f32.mxu1 %v413_v10  ;;  %v3249_v10 = vld [vmem:[%s3619_s6] ss:$0 sm:$0xff] }
  0xd7   : > { %2383 = vmatprep.mubr.f32.mxu0 %v415_v13  ;;  %2495 = vmatpush3.xpose.msra.mxu0 %v932_v11 }
  0xd8   : > { %2496 = vmatprep.subr.mxu0 %v931_v14 }
  0xd9   : > { %2461 = vmatmul.mubr.f32.gmra.mxu1 %v414_v12 }
  0xda   : > { %2384 = vmatmul.mubr.f32.gmra.mxu0 %v416_v15  ;;  %2463 = vmatprep.mubr.f32.mxu1 %v415_v13 }
  0xdb   : > { %2497 = vmatpush3.xpose.msra.mxu0 %v931_v14  ;;  %2498 = vmatprep.mubr.f32.mxu0 %v915_v16 }
  0xdd   : > { %2464 = vmatmul.mubr.f32.gmra.mxu1 %v416_v15 }
  0xde   : > { %2499 = vmatmul.mubr.f32.vlgmr.msra.gmra.mxu0 %v916_v17 }
  0xdf   : > { %2501 = vmatprep.mubr.f32.mxu0 %v917_v18 }
  0xe2   : > { %2502 = vmatmul.mubr.f32.gmra.mxu0 %v918_v19  ;;  %v3263_v19 = vld [vmem:[%s3618_s5] ss:$0 sm:$0xff] }
  0xe3   : > { %2504 = vmatprep.mubr.f32.mxu0 %v919_v20 }
  0xe6   : > { %2505 = vmatmul.mubr.f32.gmra.mxu0 %v920_v21 }
  0xe7   : > { %2507 = vmatprep.mubr.f32.mxu0 %v921_v22 }
  0xea   : > { %2508 = vmatmul.mubr.f32.gmra.mxu0 %v922_v23 }
  0xeb   : > { %2510 = vmatprep.mubr.f32.mxu0 %v923_v24 }
  0xee   : > { %2511 = vmatmul.mubr.f32.gmra.mxu0 %v924_v25 }
  0xef   : > { %2513 = vmatprep.mubr.f32.mxu0 %v925_v26 }
  0xf2   : > { %2514 = vmatmul.mubr.f32.gmra.mxu0 %v926_v27 }
  0xf3   : > { %2516 = vmatprep.mubr.f32.mxu0 %v927_v28 }
  0xf6   : > { %2517 = vmatmul.mubr.f32.gmra.mxu0 %v928_v29 }
  0xf7   : > { %2519 = vmatprep.mubr.f32.mxu0 %v929_v30 }
  0xfa   : > { %2520 = vmatmul.mubr.f32.gmra.mxu0 %v930_v31 }
 0x15e   : > { %v3182_v32 = vpop.f32.mrf.mxu0 }
 0x160   : > { %v3184_v33 = vpop.f32.mrf.mxu0 }
 0x161   : > { %v3210_v50 = vpop.f32.mrf.mxu1 }
 0x162   : > { %v3186_v34 = vpop.f32.mrf.mxu0 }
 0x163   : > { %v3214_v52 = vpop.f32.mrf.mxu1 }
 0x164   : > { %v3188_v35 = vpop.f32.mrf.mxu0 }
 0x165   : > { %v3220_v55 = vpop.f32.mrf.mxu1 }
 0x166   : > { %v3190_v36 = vpop.f32.mrf.mxu0 }
 0x167   : > { %v3224_v57 = vpop.f32.mrf.mxu1 }
 0x168   : > { %v3192_v37 = vpop.f32.mrf.mxu0 }
 0x169   : > { %v3228_v59 = vpop.f32.mrf.mxu1 }
 0x16a   : > { %v3194_v38 = vpop.f32.mrf.mxu0 }
 0x16b   : > { %v3232_v61 = vpop.f32.mrf.mxu1 }
 0x16c   : > { %v3196_v39 = vpop.f32.mrf.mxu0 }
 0x16d   : > { %v3234_v63 = vpop.f32.mrf.mxu1 }
 0x16e   : > { %v3198_v40 = vpop.f32.mrf.mxu0 }
 0x16f   : > { %v3236_v1 = vpop.f32.mrf.mxu1 }
 0x170   : > { %v3200_v41 = vpop.f32.mrf.mxu0 }
 0x171   : > { %v3238_v3 = vpop.f32.mrf.mxu1 }
 0x172   : > { %v3202_v42 = vpop.f32.mrf.mxu0 }
 0x173   : > { %v3240_v5 = vpop.f32.mrf.mxu1 }
 0x174   : > { %v3204_v43 = vpop.f32.mrf.mxu0 }
 0x175   : > { %v3242_v7 = vpop.f32.mrf.mxu1 }
 0x176   : > { %v2358_v44 = vpop.f32.mrf.mxu0 }
 0x177   : > { %v3244_v9 = vpop.f32.mrf.mxu1  ;;  %v572_v28 = vadd.f32 %v2358_v44, %v3249_v10  ;;  %v562_v44 = vadd.f32 %v3202_v42, %v3249_v10  ;;  %v552_v42 = vadd.f32 %v3198_v40, %v3249_v10  ;;  %v3307_v40 = vld [vmem:[%s3620_s7] ss:$0 sm:$0xff] }
 0x178   : > { %v566_v45 = vpop.f32.mrf.mxu0 }
 0x179   : > { %v3251_v12 = vpop.f32.mrf.mxu1 }
 0x17a   : > { %v2361_v46 = vpop.f32.mrf.mxu0 }
 0x17b   : > { %v582_v14 = vadd.f32 %v2361_v46, %v3249_v10  ;;  %v3255_v16 = vpop.f32.mrf.mxu1  ;;  %v567_v46 = vadd.f32 %v3249_v10, %v566_v45  ;;  %v557_v45 = vadd.f32 %v3249_v10, %v3204_v43 }
 0x17c   : > { %v576_v47 = vpop.f32.mrf.mxu0 }
 0x17d   : > { %v2441_v20 = vpop.f32.mrf.mxu1  ;;  %v577_v21 = vadd.f32 %v3249_v10, %v576_v47 }
 0x17e   : > { %v3206_v48 = vpop.f32.mrf.mxu0 }
 0x17f   : > { %v824_v23 = vpop.f32.mrf.mxu1 }
 0x180   : > { %v3208_v49 = vpop.f32.mrf.mxu0 }
 0x181   : > { %v3268_v26 = vpop.f32.mrf.mxu1 }
 0x182   : > { %v3212_v51 = vpop.f32.mrf.mxu0 }
 0x183   : > { %v3273_v29 = vpop.f32.mrf.mxu1 }
 0x184   : > { %v3216_v53 = vpop.f32.mrf.mxu0 }
 0x185   : > { %v3277_v31 = vpop.f32.mrf.mxu1 }
 0x186   : > { %v3218_v54 = vpop.f32.mrf.mxu0 }
 0x187   : > { %v3280_v47 = vpop.f32.mrf.mxu1 }
 0x188   : > { %v3222_v56 = vpop.f32.mrf.mxu0 }
 0x18a   : > { %v3226_v58 = vpop.f32.mrf.mxu0 }
 0x18c   : > { %v3230_v60 = vpop.f32.mrf.mxu0 }
 0x18e   : > { %v2376_v62 = vpop.f32.mrf.mxu0 }
 0x190   : > { %v626_v0 = vpop.f32.mrf.mxu0 }
 0x192   : > { %v2379_v2 = vpop.f32.mrf.mxu0 }
 0x194   : > { %v636_v4 = vpop.f32.mrf.mxu0 }
 0x196   : > { %v2382_v6 = vpop.f32.mrf.mxu0 }
 0x197   : > { %v652_v24 = vadd.f32 %v2382_v6, %v3249_v10  ;;  %v642_v6 = vadd.f32 %v2379_v2, %v3249_v10  ;;  %v632_v2 = vadd.f32 %v2376_v62, %v3249_v10 }
 0x198   : > { %v646_v8 = vpop.f32.mrf.mxu0 }
 0x199   : > { %v647_v30 = vadd.f32 %v3249_v10, %v646_v8 }
 0x19a   : > { %v2385_v11 = vpop.f32.mrf.mxu0 }
 0x19b   : > { %v662_v13 = vadd.f32 %v2385_v11, %v3249_v10  ;;  %v3283_v11 = vpop.f32.mrf.mxu1 }
 0x19c   : > { %v656_v15 = vpop.f32.mrf.mxu0 }
 0x19d   : > { %v657_v17 = vadd.f32 %v3249_v10, %v656_v15  ;;  %2130 = vmatprep.subr.mxu1 %v662_v13  ;;  %v3287_v8 = vpop.f32.mrf.mxu1  ;;  %v637_v13 = vadd.f32 %v3249_v10, %v636_v4  ;;  %v627_v4 = vadd.f32 %v3249_v10, %v626_v0  ;;  %v542_v0 = vadd.f32 %v3194_v38, %v3249_v10 }
 0x19e   : > { %2131 = vmatpush3.xpose.msra.mxu1 %v582_v14  ;;  %v3258_v18 = vpop.f32.mrf.mxu0  ;;  %v612_v38 = vadd.f32 %v3218_v54, %v3249_v10  ;;  %v815_v54 = vadd.f32 %v3307_v40, %v3255_v16  ;;  %v805_v16 = vadd.f32 %v3307_v40, %v3244_v9  ;;  %v795_v9 = vadd.f32 %v3307_v40, %v3240_v5 }
 0x19f   : > { %2132 = vmatprep.subr.mxu1 %v657_v17  ;;  %v3290_v14 = vpop.f32.mrf.mxu1  ;;  %v517_v5 = vadd.f32 %v3249_v10, %v3188_v35  ;;  %v855_v35 = vadd.f32 %v3307_v40, %v3287_v8 }
 0x1a0   : > { %v1020_v22 = vpop.f32.mrf.mxu0 }
 0x1a1   : > { %v1021_v25 = vadd.f32 %v3263_v19, %v1020_v22  ;;  %v3294_v15 = vpop.f32.mrf.mxu1 }
 0x1a2   : > { %2133 = vmatpush3.xpose.msra.mxu1 %v577_v21 }
 0x1a3   : > { %2134 = vmatprep.subr.mxu1 %v652_v24  ;;  %v3270_v27 = vmul.f32 0.088388346, %v1021_v25  ;;  %v2456_v17 = vpop.f32.mrf.mxu1  ;;  %v547_v24 = vadd.f32 %v3249_v10, %v3200_v41  ;;  %v622_v25 = vadd.f32 %v3226_v58, %v3249_v10  ;;  %v830_v41 = vadd.f32 %v2441_v20, %v3307_v40 }
 0x1a4   : > { %v820_v20 = vadd.f32 %v3251_v12, %v3307_v40  ;;  %v810_v12 = vadd.f32 %v3242_v7, %v3307_v40  ;;  %v800_v7 = vadd.f32 %v3238_v3, %v3307_v40  ;;  %v790_v3 = vadd.f32 %v3234_v63, %v3307_v40 }
 0x1a5   : > { %2162 = vmatprep.mubr.f32.mxu1 %v3270_v27  ;;  %v874_v21 = vpop.f32.mrf.mxu1  ;;  %v780_v63 = vadd.f32 %v3228_v59, %v3307_v40  ;;  %v850_v59 = vadd.f32 %v3277_v31, %v3307_v40  ;;  %v765_v31 = vadd.f32 %v3307_v40, %v3224_v57  ;;  %v755_v57 = vadd.f32 %v3307_v40, %v3214_v52 }
 0x1a6   : > { %2135 = vmatpush3.xpose.msra.mxu1 %v572_v28 }
 0x1a7   : > { %2136 = vmatprep.subr.mxu1 %v647_v30  ;;  %v2459_v22 = vpop.f32.mrf.mxu1  ;;  %v617_v30 = vadd.f32 %v3249_v10, %v3230_v60 }
 0x1a9   : > { %v884_v43 = vpop.f32.mrf.mxu1 }
 0x1aa   : > { %2137 = vmatpush3.xpose.msra.mxu1 %v567_v46 }
 0x1ab   : > { %2138 = vmatprep.subr.mxu1 %v642_v6  ;;  %v2462_v62 = vpop.f32.mrf.mxu1  ;;  %v537_v6 = vadd.f32 %v3249_v10, %v3196_v39  ;;  %v532_v39 = vadd.f32 %v3190_v36, %v3249_v10  ;;  %v527_v36 = vadd.f32 %v3249_v10, %v3192_v37  ;;  %v522_v37 = vadd.f32 %v3186_v34, %v3249_v10 }
 0x1ac   : > { %v865_v34 = vadd.f32 %v3307_v40, %v3294_v15  ;;  %v2503_v15 = vpop.f32.mrf.mxu0 }
 0x1ad   : > { %v894_v28 = vpop.f32.mrf.mxu1 }
 0x1ae   : > { %2139 = vmatpush3.xpose.msra.mxu1 %v562_v44  ;;  %v825_v44 = vadd.f32 %v3307_v40, %v824_v23  ;;  %v607_v23 = vadd.f32 %v3249_v10, %v3222_v56  ;;  %v602_v56 = vadd.f32 %v3212_v51, %v3249_v10  ;;  %v597_v51 = vadd.f32 %v3249_v10, %v3216_v53  ;;  %v1030_v8 = vpop.f32.mrf.mxu0 }
 0x1af   : > { %2140 = vmatprep.subr.mxu1 %v637_v13  ;;  %v2465_v46 = vpop.f32.mrf.mxu1  ;;  %v785_v53 = vadd.f32 %v3307_v40, %v3236_v1  ;;  %v512_v1 = vadd.f32 %v3182_v32, %v3249_v10  ;;  %v845_v32 = vadd.f32 %v3307_v40, %v3280_v47  ;;  %v760_v47 = vadd.f32 %v3210_v50, %v3307_v40 }
 0x1b0   : > { %v910_v58 = vadd.f32 %v2465_v46, %v3307_v40  ;;  %v1036_v50 = vadd.f32 %v2503_v15, %v3263_v19 }
 0x1b1   : > { %v904_v13 = vpop.f32.mrf.mxu1 }
 0x1b2   : > { %2141 = vmatpush3.xpose.msra.mxu1 %v557_v45  ;;  %v900_v45 = vadd.f32 %v2462_v62, %v3307_v40  ;;  %v905_v60 = vadd.f32 %v3307_v40, %v904_v13  ;;  %2194 = vmatprep.subr.mxu0 %v910_v58  ;;  %v2506_v62 = vpop.f32.mrf.mxu0 }
 0x1b3   : > { %2142 = vmatprep.subr.mxu1 %v632_v2  ;;  %2195 = vmatpush3.msra.mxu0 %v830_v41  ;;  %v895_v2 = vadd.f32 %v3307_v40, %v894_v28  ;;  %v1102_v28 = vmul.f32 0.088388346, %v1036_v50 }
 0x1b4   : > { %2196 = vmatprep.subr.mxu0 %v905_v60 }
 0x1b5   : > { %2197 = vmatpush3.msra.mxu0 %v825_v44 }
 0x1b6   : > { %2143 = vmatpush3.xpose.msra.mxu1 %v552_v42  ;;  %v890_v42 = vadd.f32 %v2459_v22, %v3307_v40  ;;  %2198 = vmatprep.subr.mxu0 %v900_v45  ;;  %v880_v22 = vadd.f32 %v2456_v17, %v3307_v40  ;;  %v870_v17 = vadd.f32 %v3290_v14, %v3307_v40 }
 0x1b7   : > { %2144 = vmatprep.subr.mxu1 %v627_v4  ;;  %2199 = vmatpush3.msra.mxu0 %v820_v20  ;;  %v885_v4 = vadd.f32 %v3307_v40, %v884_v43  ;;  %v592_v14 = vadd.f32 %v3206_v48, %v3249_v10  ;;  %v775_v48 = vadd.f32 %v3307_v40, %v3232_v61 }
 0x1b8   : > { %2200 = vmatprep.subr.mxu0 %v895_v2  ;;  %v770_v43 = vadd.f32 %v3220_v55, %v3307_v40  ;;  %v507_v61 = vadd.f32 %v3249_v10, %v3184_v33  ;;  %v840_v55 = vadd.f32 %v3268_v26, %v3307_v40  ;;  %v835_v33 = vadd.f32 %v3307_v40, %v3273_v29  ;;  %v1040_v26 = vpop.f32.mrf.mxu0 }
 0x1b9   : > { %2201 = vmatpush3.msra.mxu0 %v815_v54  ;;  %v1041_v29 = vadd.f32 %v3263_v19, %v1040_v26 }
 0x1ba   : > { %2145 = vmatpush3.xpose.msra.mxu1 %v547_v24  ;;  %2202 = vmatprep.subr.mxu0 %v890_v42  ;;  %v875_v24 = vadd.f32 %v3307_v40, %v874_v21  ;;  %v860_v21 = vadd.f32 %v3283_v11, %v3307_v40  ;;  %v587_v11 = vadd.f32 %v3249_v10, %v3208_v49 }
 0x1bb   : > { %2146 = vmatprep.subr.mxu1 %v622_v25  ;;  %2203 = vmatpush3.msra.mxu0 %v810_v12  ;;  %v1026_v49 = vadd.f32 %v3258_v18, %v3263_v19  ;;  %v1031_v25 = vadd.f32 %v3263_v19, %v1030_v8  ;;  %v1103_v52 = vmul.f32 0.088388346, %v1041_v29 }
 0x1bc   : > { %2204 = vmatprep.subr.mxu0 %v885_v4 }
 0x1bd   : > { %2205 = vmatpush3.msra.mxu0 %v805_v16  ;;  %v1100_v10 = vmul.f32 0.088388346, %v1026_v49  ;;  %v1101_v18 = vmul.f32 0.088388346, %v1031_v25 }
 0x1be   : > { %2147 = vmatpush3.xpose.msra.mxu1 %v542_v0  ;;  %2206 = vmatprep.subr.mxu0 %v880_v22  ;;  %v2509_v0 = vpop.f32.mrf.mxu0 }
 0x1bf   : > { %2148 = vmatprep.subr.mxu1 %v617_v30  ;;  %2207 = vmatpush3.msra.mxu0 %v800_v7  ;;  %v1056_v44 = vadd.f32 %v2509_v0, %v3263_v19 }
 0x1c0   : > { %2208 = vmatprep.subr.mxu0 %v875_v24  ;;  %v1050_v40 = vpop.f32.mrf.mxu0 }
 0x1c1   : > { %2209 = vmatpush3.msra.mxu0 %v795_v9  ;;  %v1051_v30 = vadd.f32 %v3263_v19, %v1050_v40  ;;  %v1106_v45 = vmul.f32 0.088388346, %v1056_v44 }
 0x1c2   : > { %2149 = vmatpush3.xpose.msra.mxu1 %v537_v6  ;;  %2210 = vmatprep.subr.mxu0 %v870_v17  ;;  %v2512_v41 = vpop.f32.mrf.mxu0 }
 0x1c3   : > { %2150 = vmatprep.subr.mxu1 %v612_v38  ;;  %2211 = vmatpush3.msra.mxu0 %v790_v3  ;;  %v1105_v58 = vmul.f32 0.088388346, %v1051_v30  ;;  %v1066_v2 = vadd.f32 %v2512_v41, %v3263_v19 }
 0x1c4   : > { %2212 = vmatprep.subr.mxu0 %v865_v34  ;;  %v1060_v6 = vpop.f32.mrf.mxu0 }
 0x1c5   : > { %2213 = vmatpush3.msra.mxu0 %v785_v53  ;;  %v1061_v13 = vadd.f32 %v3263_v19, %v1060_v6 }
 0x1c6   : > { %2151 = vmatpush3.xpose.msra.mxu1 %v532_v39  ;;  %2214 = vmatprep.subr.mxu0 %v860_v21  ;;  %v2515_v38 = vpop.f32.mrf.mxu0 }
 0x1c7   : > { %2152 = vmatprep.subr.mxu1 %v607_v23  ;;  %2215 = vmatpush3.msra.mxu0 %v780_v63  ;;  %v1107_v60 = vmul.f32 0.088388346, %v1061_v13  ;;  %v1108_v23 = vmul.f32 0.088388346, %v1066_v2  ;;  %v1076_v4 = vadd.f32 %v2515_v38, %v3263_v19 }
 0x1c8   : > { %2216 = vmatprep.subr.mxu0 %v855_v35  ;;  %v1070_v20 = vpop.f32.mrf.mxu0 }
 0x1c9   : > { %2217 = vmatpush3.msra.mxu0 %v775_v48  ;;  %v1071_v39 = vadd.f32 %v3263_v19, %v1070_v20 }
 0x1ca   : > { %2153 = vmatpush3.xpose.msra.mxu1 %v527_v36  ;;  %2218 = vmatprep.subr.mxu0 %v850_v59  ;;  %v2518_v54 = vpop.f32.mrf.mxu0 }
 0x1cb   : > { %2154 = vmatprep.subr.mxu1 %v602_v56  ;;  %2219 = vmatpush3.msra.mxu0 %v770_v43  ;;  %v1109_v42 = vmul.f32 0.088388346, %v1071_v39  ;;  %v1110_v56 = vmul.f32 0.088388346, %v1076_v4  ;;  %v1086_v24 = vadd.f32 %v2518_v54, %v3263_v19 }
 0x1cc   : > { %2220 = vmatprep.subr.mxu0 %v845_v32  ;;  %v1080_v12 = vpop.f32.mrf.mxu0 }
 0x1cd   : > { %2221 = vmatpush3.msra.mxu0 %v765_v31  ;;  %v1081_v36 = vadd.f32 %v3263_v19, %v1080_v12  ;;  %v1112_v9 = vmul.f32 0.088388346, %v1086_v24 }
 0x1ce   : > { %2155 = vmatpush3.xpose.msra.mxu1 %v522_v37  ;;  %2222 = vmatprep.subr.mxu0 %v840_v55  ;;  %v2521_v16 = vpop.f32.mrf.mxu0 }
 0x1cf   : > { %2156 = vmatprep.subr.mxu1 %v597_v51  ;;  %2223 = vmatpush3.msra.mxu0 %v760_v47  ;;  %v1111_v22 = vmul.f32 0.088388346, %v1081_v36  ;;  %v1096_v17 = vadd.f32 %v2521_v16, %v3263_v19 }
 0x1d0   : > { %2224 = vmatprep.subr.mxu0 %v835_v33  ;;  %v1090_v7 = vpop.f32.mrf.mxu0 }
 0x1d1   : > { %2225 = vmatpush3.msra.mxu0 %v755_v57  ;;  %v1091_v37 = vadd.f32 %v3263_v19, %v1090_v7  ;;  %v1114_v3 = vmul.f32 0.088388346, %v1096_v17 }
 0x1d2   : > { %2157 = vmatpush3.xpose.msra.mxu1 %v517_v5 }
 0x1d3   : > { %2158 = vmatprep.subr.mxu1 %v592_v14  ;;  %v1113_v51 = vmul.f32 0.088388346, %v1091_v37 }
 0x1d6   : > { %2159 = vmatpush3.xpose.msra.mxu1 %v512_v1 }
 0x1d7   : > { %2160 = vmatprep.subr.mxu1 %v587_v11 }
 0x1da   : > { %2161 = vmatpush3.xpose.msra.mxu1 %v507_v61 }
 0x1dd   : > { %2163 = vmatmul.mubr.f32.vlgmr.msra.gmra.mxu1 %v3270_v27  ;;  %v1046_v27 = vadd.f32 %v2506_v62, %v3263_v19 }
 0x1de   : > { %2164 = vmatprep.mubr.f32.mxu1 %v1100_v10 }
 0x1df   : > { %v1104_v46 = vmul.f32 0.088388346, %v1046_v27 }
 0x1e1   : > { %2165 = vmatmul.mubr.f32.gmra.mxu1 %v1100_v10 }
 0x1e2   : > { %2166 = vmatprep.mubr.f32.mxu1 %v1101_v18 }
 0x1e5   : > { %2167 = vmatmul.mubr.f32.gmra.mxu1 %v1101_v18 }
 0x1e6   : > { %2168 = vmatprep.mubr.f32.mxu1 %v1102_v28 }
 0x1e9   : > { %2169 = vmatmul.mubr.f32.gmra.mxu1 %v1102_v28 }
 0x1ea   : > { %2170 = vmatprep.mubr.f32.mxu1 %v1103_v52 }
 0x1ed   : > { %2171 = vmatmul.mubr.f32.gmra.mxu1 %v1103_v52 }
 0x1ee   : > { %2172 = vmatprep.mubr.f32.mxu1 %v1104_v46 }
 0x1f1   : > { %2173 = vmatmul.mubr.f32.gmra.mxu1 %v1104_v46 }
 0x1f2   : > { %2174 = vmatprep.mubr.f32.mxu1 %v1105_v58 }
 0x1f5   : > { %2175 = vmatmul.mubr.f32.gmra.mxu1 %v1105_v58 }
 0x1f6   : > { %2176 = vmatprep.mubr.f32.mxu1 %v1106_v45 }
 0x1f9   : > { %2177 = vmatmul.mubr.f32.gmra.mxu1 %v1106_v45 }
 0x1fa   : > { %2178 = vmatprep.mubr.f32.mxu1 %v1107_v60 }
 0x1fd   : > { %2179 = vmatmul.mubr.f32.gmra.mxu1 %v1107_v60 }
 0x1fe   : > { %2180 = vmatprep.mubr.f32.mxu1 %v1108_v23 }
 0x201   : > { %2181 = vmatmul.mubr.f32.gmra.mxu1 %v1108_v23 }
 0x202   : > { %2182 = vmatprep.mubr.f32.mxu1 %v1109_v42 }
 0x205   : > { %2183 = vmatmul.mubr.f32.gmra.mxu1 %v1109_v42 }
 0x206   : > { %2184 = vmatprep.mubr.f32.mxu1 %v1110_v56 }
 0x209   : > { %2185 = vmatmul.mubr.f32.gmra.mxu1 %v1110_v56 }
 0x20a   : > { %2186 = vmatprep.mubr.f32.mxu1 %v1111_v22 }
 0x20d   : > { %2187 = vmatmul.mubr.f32.gmra.mxu1 %v1111_v22 }
 0x20e   : > { %2188 = vmatprep.mubr.f32.mxu1 %v1112_v9 }
 0x211   : > { %2189 = vmatmul.mubr.f32.gmra.mxu1 %v1112_v9 }
 0x212   : > { %2190 = vmatprep.mubr.f32.mxu1 %v1113_v51 }
 0x215   : > { %2191 = vmatmul.mubr.f32.gmra.mxu1 %v1113_v51 }
 0x216   : > { %2192 = vmatprep.mubr.f32.mxu1 %v1114_v3 }
 0x219   : > { %2193 = vmatmul.mubr.f32.gmra.mxu1 %v1114_v3 }
 0x29d   : > { %v3410_v34 = vpop.f32.mrf.mxu1 }
 0x29f   : > { %v3412_v5 = vpop.f32.mrf.mxu1 }
 0x2a0   : > { %v1276_v53 = vmax.f32 %v3410_v34, %v3412_v5 }
 0x2a1   : > { %v3416_v14 = vpop.f32.mrf.mxu1 }
 0x2a2   : > { %1277 = vmax.xlane.f32.xlu0 %v1276_v53 }
 0x2a3   : > { %v3418_v21 = vpop.f32.mrf.mxu1 }
 0x2a4   : > { %v1279_v19 = vmax.f32 %v3416_v14, %v3418_v21 }
 0x2a5   : > { %v3422_v63 = vpop.f32.mrf.mxu1 }
 0x2a6   : > { %1280 = vmax.xlane.f32.xlu0 %v1279_v19 }
 0x2a7   : > { %v3424_v15 = vpop.f32.mrf.mxu1 }
 0x2a8   : > { %v1282_v35 = vmax.f32 %v3422_v63, %v3424_v15 }
 0x2a9   : > { %v3428_v1 = vpop.f32.mrf.mxu1 }
 0x2aa   : > { %1283 = vmax.xlane.f32.xlu1 %v1282_v35 }
 0x2ab   : > { %v3430_v48 = vpop.f32.mrf.mxu1 }
 0x2ac   : > { %v1285_v11 = vmax.f32 %v3428_v1, %v3430_v48 }
 0x2ad   : > { %v3434_v59 = vpop.f32.mrf.mxu1 }
 0x2ae   : > { %1286 = vmax.xlane.f32.xlu1 %v1285_v11 }
 0x2af   : > { %v3436_v43 = vpop.f32.mrf.mxu1 }
 0x2b0   : > { %v1288_v8 = vmax.f32 %v3434_v59, %v3436_v43 }
 0x2b1   : > { %v3440_v32 = vpop.f32.mrf.mxu1 }
 0x2b2   : > { %1289 = vmax.xlane.f32.xlu0 %v1288_v8 }
 0x2b3   : > { %v3442_v61 = vpop.f32.mrf.mxu1 }
 0x2b4   : > { %v1291_v49 = vmax.f32 %v3440_v32, %v3442_v61 }
 0x2b5   : > { %v3446_v31 = vpop.f32.mrf.mxu1 }
 0x2b6   : > { %1292 = vmax.xlane.f32.xlu1 %v1291_v49 }
 0x2b7   : > { %v3448_v55 = vpop.f32.mrf.mxu1 }
 0x2b8   : > { %v1294_v25 = vmax.f32 %v3446_v31, %v3448_v55 }
 0x2b9   : > { %v3452_v47 = vpop.f32.mrf.mxu1 }
 0x2ba   : > { %1295 = vmax.xlane.f32.xlu0 %v1294_v25 }
 0x2bb   : > { %v3454_v62 = vpop.f32.mrf.mxu1 }
 0x2bc   : > { %v1297_v33 = vmax.f32 %v3452_v47, %v3454_v62 }
 0x2bd   : > { %v3458_v10 = vpop.f32.mrf.mxu1 }
 0x2be   : > { %1298 = vmax.xlane.f32.xlu1 %v1297_v33 }
 0x2bf   : > { %v3460_v57 = vpop.f32.mrf.mxu1 }
 0x2c0   : > { %v1300_v18 = vmax.f32 %v3458_v10, %v3460_v57 }
 0x2c1   : > { %v3464_v26 = vpop.f32.mrf.mxu1 }
 0x2c2   : > { %1301 = vmax.xlane.f32.xlu0 %v1300_v18 }
 0x2c3   : > { %v3466_v50 = vpop.f32.mrf.mxu1 }
 0x2c4   : > { %v1303_v29 = vmax.f32 %v3464_v26, %v3466_v50 }
 0x2c5   : > { %v3470_v0 = vpop.f32.mrf.mxu1 }
 0x2c6   : > { %1304 = vmax.xlane.f32.xlu1 %v1303_v29 }
 0x2c7   : > { %v3472_v28 = vpop.f32.mrf.mxu1 }
 0x2c8   : > { %v1306_v52 = vmax.f32 %v3470_v0, %v3472_v28 }
 0x2c9   : > { %v3476_v40 = vpop.f32.mrf.mxu1 }
 0x2ca   : > { %1307 = vmax.xlane.f32.xlu0 %v1306_v52 }
 0x2cb   : > { %v3478_v27 = vpop.f32.mrf.mxu1 }
 0x2cc   : > { %v1309_v30 = vmax.f32 %v3476_v40, %v3478_v27 }
 0x2cd   : > { %v3482_v41 = vpop.f32.mrf.mxu1 }
 0x2ce   : > { %1310 = vmax.xlane.f32.xlu1 %v1309_v30 }
 0x2cf   : > { %v3484_v46 = vpop.f32.mrf.mxu1 }
 0x2d0   : > { %v1312_v58 = vmax.f32 %v3482_v41, %v3484_v46 }
 0x2d1   : > { %v3488_v6 = vpop.f32.mrf.mxu1 }
 0x2d2   : > { %1313 = vmax.xlane.f32.xlu0 %v1312_v58 }
 0x2d3   : > { %v3490_v44 = vpop.f32.mrf.mxu1 }
 0x2d4   : > { %v1315_v13 = vmax.f32 %v3488_v6, %v3490_v44 }
 0x2d5   : > { %v3494_v38 = vpop.f32.mrf.mxu1 }
 0x2d6   : > { %1316 = vmax.xlane.f32.xlu1 %v1315_v13 }
 0x2d7   : > { %v3496_v45 = vpop.f32.mrf.mxu1 }
 0x2d8   : > { %v1318_v60 = vmax.f32 %v3494_v38, %v3496_v45 }
 0x2d9   : > { %v3500_v20 = vpop.f32.mrf.mxu1 }
 0x2da   : > { %1319 = vmax.xlane.f32.xlu0 %v1318_v60 }
 0x2db   : > { %v3502_v2 = vpop.f32.mrf.mxu1 }
 0x2dc   : > { %v1321_v39 = vmax.f32 %v3500_v20, %v3502_v2 }
 0x2de   : > { %1322 = vmax.xlane.f32.xlu1 %v1321_v39 }
 0x32b   : > { %v1278_v54 = vpop.xlane.xlu0 %1277 }
 0x32c   : > { %v1324_v23 = vsub.f32 %v3410_v34, %v1278_v54  ;;  %v1325_v42 = vsub.f32 %v3412_v5, %v1278_v54 }
 0x32e   : > { %v1356_v12 = vmul.f32 1.442695, %v1324_v23  ;;  %v1358_v4 = vmul.f32 1.442695, %v1325_v42 }
 0x32f   : > { %v1281_v36 = vpop.xlane.xlu0 %1280 }
 0x330   : > { %2672 = vpow2.f32 %v1356_v12  ;;  %v1326_v16 = vsub.f32 %v3416_v14, %v1281_v36  ;;  %v1327_v56 = vsub.f32 %v3418_v21, %v1281_v36 }
 0x331   : > { %2674 = vpow2.f32 %v1358_v4 }
 0x332   : > { %v1360_v22 = vmul.f32 1.442695, %v1326_v16  ;;  %v1362_v7 = vmul.f32 1.442695, %v1327_v56  ;;  %v1692_v56 = vld [vmem:[#allocation10 + $0x78] sm:$0xff] }
 0x333   : > { %v1284_v24 = vpop.xlane.xlu1 %1283  ;;  %2522 = vmatprep.subr.mxu1 %v1692_v56 }
 0x334   : > { %2676 = vpow2.f32 %v1360_v22  ;;  %v1328_v37 = vsub.f32 %v3422_v63, %v1284_v24  ;;  %v1329_v9 = vsub.f32 %v3424_v15, %v1284_v24  ;;  %2523 = vmatpush3.xpose.msra.mxu1 %v1692_v56 }
 0x335   : > { %2678 = vpow2.f32 %v1362_v7 }
 0x336   : > { %v1364_v51 = vmul.f32 1.442695, %v1328_v37  ;;  %v1366_v17 = vmul.f32 1.442695, %v1329_v9 }
 0x337   : > { %v1287_v3 = vpop.xlane.xlu1 %1286 }
 0x338   : > { %2680 = vpow2.f32 %v1364_v51  ;;  %v1330_v34 = vsub.f32 %v3428_v1, %v1287_v3  ;;  %v1331_v5 = vsub.f32 %v3430_v48, %v1287_v3 }
 0x339   : > { %2682 = vpow2.f32 %v1366_v17  ;;  %v1691_v17 = vld [vmem:[#allocation10 + $0x70] sm:$0xff] }
 0x33a   : > { %v1368_v53 = vmul.f32 1.442695, %v1330_v34  ;;  %v1370_v14 = vmul.f32 1.442695, %v1331_v5  ;;  %2524 = vmatprep.subr.mxu1 %v1691_v17 }
 0x33b   : > { %v1290_v21 = vpop.xlane.xlu0 %1289  ;;  %2525 = vmatpush3.xpose.msra.mxu1 %v1691_v17  ;;  %v1684_v17 = vld [vmem:[#allocation10 + $0x38] sm:$0xff] }
 0x33c   : > { %2684 = vpow2.f32 %v1368_v53  ;;  %v1332_v19 = vsub.f32 %v3434_v59, %v1290_v21  ;;  %v1333_v63 = vsub.f32 %v3436_v43, %v1290_v21 }
 0x33d   : > { %v2673_v35 = vpop.eup %2672  ;;  %2686 = vpow2.f32 %v1370_v14 }
 0x33e   : > { %v2675_v15 = vpop.eup %2674  ;;  %v1372_v11 = vmul.f32 1.442695, %v1332_v19  ;;  %v1374_v8 = vmul.f32 1.442695, %v1333_v63  ;;  %v1690_v19 = vld [vmem:[#allocation10 + $0x68] sm:$0xff] }
 0x33f   : > { %1532 = vmatprep.mubr.f32.mxu0 %v2675_v15  ;;  %v1293_v49 = vpop.xlane.xlu1 %1292  ;;  %v1420_v25 = vadd.f32 %v2675_v15, %v2673_v35  ;;  %2526 = vmatprep.subr.mxu1 %v1690_v19 }
 0x340   : > { %2688 = vpow2.f32 %v1372_v11  ;;  %1533 = vmatmul.mubr.f32.vlgmr.msra.gmra.mxu0 %v2673_v35  ;;  %v1334_v1 = vsub.f32 %v3440_v32, %v1293_v49  ;;  %v1335_v48 = vsub.f32 %v3442_v61, %v1293_v49  ;;  %2527 = vmatpush3.xpose.msra.mxu1 %v1690_v19 }
 0x341   : > { %v2677_v33 = vpop.eup %2676  ;;  %2690 = vpow2.f32 %v1374_v8  ;;  %1421 = vadd.xlane.f32.xlu0 %v1420_v25  ;;  %v1689_v25 = vld [vmem:[#allocation10 + $0x60] sm:$0xff] }
 0x342   : > { %v2679_v59 = vpop.eup %2678  ;;  %v1376_v18 = vmul.f32 1.442695, %v1334_v1  ;;  %v1378_v43 = vmul.f32 1.442695, %v1335_v48  ;;  %2528 = vmatprep.subr.mxu1 %v1689_v25 }
 0x343   : > { %1537 = vmatprep.mubr.f32.mxu0 %v2679_v59  ;;  %v1296_v29 = vpop.xlane.xlu0 %1295  ;;  %v1423_v52 = vadd.f32 %v2679_v59, %v2677_v33 }
 0x344   : > { %2692 = vpow2.f32 %v1376_v18  ;;  %1538 = vmatmul.mubr.f32.gmra.mxu0 %v2677_v33  ;;  %v1336_v30 = vsub.f32 %v3446_v31, %v1296_v29  ;;  %v1337_v58 = vsub.f32 %v3448_v55, %v1296_v29  ;;  %2529 = vmatpush3.xpose.msra.mxu1 %v1689_v25  ;;  %v1688_v29 = vld [vmem:[#allocation10 + $0x58] sm:$0xff] }
 0x345   : > { %v2681_v13 = vpop.eup %2680  ;;  %2694 = vpow2.f32 %v1378_v43  ;;  %1424 = vadd.xlane.f32.xlu1 %v1423_v52  ;;  %2530 = vmatprep.subr.mxu1 %v1688_v29 }
 0x346   : > { %v2683_v32 = vpop.eup %2682  ;;  %v1380_v61 = vmul.f32 1.442695, %v1336_v30  ;;  %v1382_v60 = vmul.f32 1.442695, %v1337_v58 }
 0x347   : > { %1542 = vmatprep.mubr.f32.mxu0 %v2683_v32  ;;  %v1299_v39 = vpop.xlane.xlu1 %1298  ;;  %v1426_v54 = vadd.f32 %v2683_v32, %v2681_v13 }
 0x348   : > { %2696 = vpow2.f32 %v1380_v61  ;;  %1543 = vmatmul.mubr.f32.gmra.mxu0 %v2681_v13  ;;  %v1338_v23 = vsub.f32 %v3452_v47, %v1299_v39  ;;  %v1339_v42 = vsub.f32 %v3454_v62, %v1299_v39  ;;  %2531 = vmatpush3.xpose.msra.mxu1 %v1688_v29 }
 0x349   : > { %v2685_v12 = vpop.eup %2684  ;;  %2698 = vpow2.f32 %v1382_v60  ;;  %1427 = vadd.xlane.f32.xlu0 %v1426_v54  ;;  %v1687_v60 = vld [vmem:[#allocation10 + $0x50] sm:$0xff] }
 0x34a   : > { %v2687_v31 = vpop.eup %2686  ;;  %v1384_v55 = vmul.f32 1.442695, %v1338_v23  ;;  %v1386_v4 = vmul.f32 1.442695, %v1339_v42  ;;  %2532 = vmatprep.subr.mxu1 %v1687_v60 }
 0x34b   : > { %1547 = vmatprep.mubr.f32.mxu0 %v2687_v31  ;;  %v1302_v36 = vpop.xlane.xlu0 %1301  ;;  %v1429_v16 = vadd.f32 %v2687_v31, %v2685_v12 }
 0x34c   : > { %2700 = vpow2.f32 %v1384_v55  ;;  %1548 = vmatmul.mubr.f32.gmra.mxu0 %v2685_v12  ;;  %v1340_v22 = vsub.f32 %v3458_v10, %v1302_v36  ;;  %v1341_v7 = vsub.f32 %v3460_v57, %v1302_v36  ;;  %2533 = vmatpush3.xpose.msra.mxu1 %v1687_v60  ;;  %v1686_v55 = vld [vmem:[#allocation10 + $0x48] sm:$0xff] }
 0x34d   : > { %v2689_v47 = vpop.eup %2688  ;;  %2702 = vpow2.f32 %v1386_v4  ;;  %1430 = vadd.xlane.f32.xlu1 %v1429_v16  ;;  %2534 = vmatprep.subr.mxu1 %v1686_v55 }
 0x34e   : > { %v2691_v62 = vpop.eup %2690  ;;  %v1388_v24 = vmul.f32 1.442695, %v1340_v22  ;;  %v1390_v37 = vmul.f32 1.442695, %v1341_v7 }
 0x34f   : > { %1552 = vmatprep.mubr.f32.mxu0 %v2691_v62  ;;  %v1305_v9 = vpop.xlane.xlu1 %1304  ;;  %v1432_v51 = vadd.f32 %v2691_v62, %v2689_v47 }
 0x350   : > { %2704 = vpow2.f32 %v1388_v24  ;;  %1553 = vmatmul.mubr.f32.gmra.mxu0 %v2689_v47  ;;  %v1342_v3 = vsub.f32 %v3464_v26, %v1305_v9  ;;  %v1343_v10 = vsub.f32 %v3466_v50, %v1305_v9  ;;  %2535 = vmatpush3.xpose.msra.mxu1 %v1686_v55  ;;  %v1685_v47 = vld [vmem:[#allocation10 + $0x40] sm:$0xff] }
 0x351   : > { %v2693_v57 = vpop.eup %2692  ;;  %2706 = vpow2.f32 %v1390_v37  ;;  %1433 = vadd.xlane.f32.xlu0 %v1432_v51  ;;  %2536 = vmatprep.subr.mxu1 %v1685_v47 }
 0x352   : > { %v2695_v34 = vpop.eup %2694  ;;  %v1392_v5 = vmul.f32 1.442695, %v1342_v3  ;;  %v1394_v53 = vmul.f32 1.442695, %v1343_v10  ;;  %v1683_v10 = vld [vmem:[#allocation10 + $0x30] sm:$0xff] }
 0x353   : > { %1557 = vmatprep.mubr.f32.mxu0 %v2695_v34  ;;  %v1308_v14 = vpop.xlane.xlu0 %1307  ;;  %v1435_v21 = vadd.f32 %v2695_v34, %v2693_v57 }
 0x354   : > { %2708 = vpow2.f32 %v1392_v5  ;;  %1558 = vmatmul.mubr.f32.gmra.mxu0 %v2693_v57  ;;  %v1344_v63 = vsub.f32 %v3470_v0, %v1308_v14  ;;  %v1345_v26 = vsub.f32 %v3472_v28, %v1308_v14  ;;  %2537 = vmatpush3.xpose.msra.mxu1 %v1685_v47 }
 0x355   : > { %v2697_v50 = vpop.eup %2696  ;;  %2710 = vpow2.f32 %v1394_v53  ;;  %1436 = vadd.xlane.f32.xlu1 %v1435_v21  ;;  %2538 = vmatprep.subr.mxu1 %v1684_v17  ;;  %v1682_v53 = vld [vmem:[#allocation10 + $0x28] sm:$0xff] }
 0x356   : > { %v2699_v35 = vpop.eup %2698  ;;  %v1396_v15 = vmul.f32 1.442695, %v1344_v63  ;;  %v1398_v11 = vmul.f32 1.442695, %v1345_v26  ;;  %v1681_v63 = vld [vmem:[#allocation10 + $0x20] sm:$0xff] }
 0x357   : > { %1562 = vmatprep.mubr.f32.mxu0 %v2699_v35  ;;  %v1311_v8 = vpop.xlane.xlu1 %1310  ;;  %v1438_v49 = vadd.f32 %v2699_v35, %v2697_v50 }
 0x358   : > { %2712 = vpow2.f32 %v1396_v15  ;;  %1563 = vmatmul.mubr.f32.gmra.mxu0 %v2697_v50  ;;  %v1346_v1 = vsub.f32 %v3476_v40, %v1311_v8  ;;  %v1347_v0 = vsub.f32 %v3478_v27, %v1311_v8  ;;  %2539 = vmatpush3.xpose.msra.mxu1 %v1684_v17  ;;  %v1680_v15 = vld [vmem:[#allocation10 + $0x18] sm:$0xff]  ;;  %v1678_v8 = vld [vmem:[#allocation10 + $0x8] sm:$0xff] }
 0x359   : > { %v2701_v28 = vpop.eup %2700  ;;  %2714 = vpow2.f32 %v1398_v11  ;;  %1439 = vadd.xlane.f32.xlu0 %v1438_v49  ;;  %2540 = vmatprep.subr.mxu1 %v1683_v10  ;;  %v1679_v11 = vld [vmem:[#allocation10 + $0x10] sm:$0xff]  ;;  %v1677_v49 = vld [vmem:[#allocation10] sm:$0xff] }
 0x35a   : > { %v2703_v48 = vpop.eup %2702  ;;  %v1400_v33 = vmul.f32 1.442695, %v1346_v1  ;;  %v1402_v59 = vmul.f32 1.442695, %v1347_v0 }
 0x35b   : > { %1567 = vmatprep.mubr.f32.mxu0 %v2703_v48  ;;  %v1314_v18 = vpop.xlane.xlu0 %1313  ;;  %v1441_v43 = vadd.f32 %v2703_v48, %v2701_v28 }
 0x35c   : > { %2716 = vpow2.f32 %v1400_v33  ;;  %1568 = vmatmul.mubr.f32.gmra.mxu0 %v2701_v28  ;;  %v1348_v52 = vsub.f32 %v3482_v41, %v1314_v18  ;;  %v1349_v40 = vsub.f32 %v3484_v46, %v1314_v18  ;;  %2541 = vmatpush3.xpose.msra.mxu1 %v1683_v10 }
 0x35d   : > { %v2705_v27 = vpop.eup %2704  ;;  %2718 = vpow2.f32 %v1402_v59  ;;  %1442 = vadd.xlane.f32.xlu1 %v1441_v43  ;;  %2542 = vmatprep.subr.mxu1 %v1682_v53 }
 0x35e   : > { %v2707_v30 = vpop.eup %2706  ;;  %v1404_v58 = vmul.f32 1.442695, %v1348_v52  ;;  %v1406_v13 = vmul.f32 1.442695, %v1349_v40 }
 0x35f   : > { %1572 = vmatprep.mubr.f32.mxu0 %v2707_v30  ;;  %v1317_v32 = vpop.xlane.xlu1 %1316  ;;  %v1444_v61 = vadd.f32 %v2707_v30, %v2705_v27 }
 0x360   : > { %2720 = vpow2.f32 %v1404_v58  ;;  %1573 = vmatmul.mubr.f32.gmra.mxu0 %v2705_v27  ;;  %v1350_v39 = vsub.f32 %v3488_v6, %v1317_v32  ;;  %v1351_v41 = vsub.f32 %v3490_v44, %v1317_v32  ;;  %2543 = vmatpush3.xpose.msra.mxu1 %v1682_v53 }
 0x361   : > { %v2709_v46 = vpop.eup %2708  ;;  %2722 = vpow2.f32 %v1406_v13  ;;  %1445 = vadd.xlane.f32.xlu0 %v1444_v61  ;;  %2544 = vmatprep.subr.mxu1 %v1681_v63 }
 0x362   : > { %v2711_v54 = vpop.eup %2710  ;;  %v1408_v23 = vmul.f32 1.442695, %v1350_v39  ;;  %v1410_v42 = vmul.f32 1.442695, %v1351_v41 }
 0x363   : > { %1577 = vmatprep.mubr.f32.mxu0 %v2711_v54  ;;  %v1320_v12 = vpop.xlane.xlu0 %1319  ;;  %v1447_v31 = vadd.f32 %v2711_v54, %v2709_v46 }
 0x364   : > { %2724 = vpow2.f32 %v1408_v23  ;;  %1578 = vmatmul.mubr.f32.gmra.mxu0 %v2709_v46  ;;  %v1352_v4 = vsub.f32 %v3494_v38, %v1320_v12  ;;  %v1353_v6 = vsub.f32 %v3496_v45, %v1320_v12  ;;  %2545 = vmatpush3.xpose.msra.mxu1 %v1681_v63 }
 0x365   : > { %v2713_v44 = vpop.eup %2712  ;;  %2726 = vpow2.f32 %v1410_v42  ;;  %1448 = vadd.xlane.f32.xlu1 %v1447_v31  ;;  %2546 = vmatprep.subr.mxu1 %v1680_v15 }
 0x366   : > { %v2715_v36 = vpop.eup %2714  ;;  %v1412_v16 = vmul.f32 1.442695, %v1352_v4  ;;  %v1414_v56 = vmul.f32 1.442695, %v1353_v6 }
 0x367   : > { %1582 = vmatprep.mubr.f32.mxu0 %v2715_v36  ;;  %v1323_v22 = vpop.xlane.xlu1 %1322  ;;  %v1450_v7 = vadd.f32 %v2715_v36, %v2713_v44 }
 0x368   : > { %2728 = vpow2.f32 %v1412_v16  ;;  %1583 = vmatmul.mubr.f32.gmra.mxu0 %v2713_v44  ;;  %v1354_v62 = vsub.f32 %v3500_v20, %v1323_v22  ;;  %v1355_v38 = vsub.f32 %v3502_v2, %v1323_v22  ;;  %2547 = vmatpush3.xpose.msra.mxu1 %v1680_v15 }
 0x369   : > { %v2717_v45 = vpop.eup %2716  ;;  %2730 = vpow2.f32 %v1414_v56  ;;  %1451 = vadd.xlane.f32.xlu0 %v1450_v7  ;;  %2548 = vmatprep.subr.mxu1 %v1679_v11 }
 0x36a   : > { %v2719_v24 = vpop.eup %2718  ;;  %v1416_v37 = vmul.f32 1.442695, %v1354_v62  ;;  %v1418_v9 = vmul.f32 1.442695, %v1355_v38 }
 0x36b   : > { %1587 = vmatprep.mubr.f32.mxu0 %v2719_v24  ;;  %v1453_v51 = vadd.f32 %v2719_v24, %v2717_v45 }
 0x36c   : > { %2732 = vpow2.f32 %v1416_v37  ;;  %1588 = vmatmul.mubr.f32.gmra.mxu0 %v2717_v45  ;;  %2549 = vmatpush3.xpose.msra.mxu1 %v1679_v11 }
 0x36d   : > { %v2721_v3 = vpop.eup %2720  ;;  %2734 = vpow2.f32 %v1418_v9  ;;  %1454 = vadd.xlane.f32.xlu1 %v1453_v51  ;;  %2550 = vmatprep.subr.mxu1 %v1678_v8 }
 0x36e   : > { %v2723_v20 = vpop.eup %2722 }
 0x36f   : > { %1592 = vmatprep.mubr.f32.mxu0 %v2723_v20  ;;  %v1456_v2 = vadd.f32 %v2723_v20, %v2721_v3 }
 0x370   : > { %1593 = vmatmul.mubr.f32.gmra.mxu0 %v2721_v3  ;;  %2551 = vmatpush3.xpose.msra.mxu1 %v1678_v8 }
 0x371   : > { %v2725_v57 = vpop.eup %2724  ;;  %1457 = vadd.xlane.f32.xlu0 %v1456_v2  ;;  %2552 = vmatprep.subr.mxu1 %v1677_v49 }
 0x372   : > { %v2727_v34 = vpop.eup %2726 }
 0x373   : > { %1597 = vmatprep.mubr.f32.mxu0 %v2727_v34  ;;  %v1459_v5 = vadd.f32 %v2727_v34, %v2725_v57 }
 0x374   : > { %1598 = vmatmul.mubr.f32.gmra.mxu0 %v2725_v57  ;;  %2553 = vmatpush3.xpose.msra.mxu1 %v1677_v49 }
 0x375   : > { %v2729_v14 = vpop.eup %2728  ;;  %1460 = vadd.xlane.f32.xlu1 %v1459_v5 }
 0x376   : > { %v2731_v21 = vpop.eup %2730 }
 0x377   : > { %1602 = vmatprep.mubr.f32.mxu0 %v2731_v21  ;;  %v1462_v19 = vadd.f32 %v2731_v21, %v2729_v14 }
 0x378   : > { %1603 = vmatmul.mubr.f32.gmra.mxu0 %v2729_v14 }
 0x379   : > { %v2733_v26 = vpop.eup %2732  ;;  %1463 = vadd.xlane.f32.xlu0 %v1462_v19 }
 0x37a   : > { %v2735_v50 = vpop.eup %2734 }
 0x37b   : > { %1607 = vmatprep.mubr.f32.mxu0 %v2735_v50  ;;  %v1465_v35 = vadd.f32 %v2735_v50, %v2733_v26 }
 0x37c   : > { %1608 = vmatmul.mubr.f32.gmra.mxu0 %v2733_v26 }
 0x37d   : > { %1466 = vadd.xlane.f32.xlu1 %v1465_v35 }
 0x3ca   : > { %v1422_v25 = vpop.xlane.xlu0 %1421 }
 0x3cb   : > { %2736 = vrcp.f32 %v1422_v25 }
 0x3ce   : > { %v1425_v1 = vpop.xlane.xlu1 %1424 }
 0x3cf   : > { %2738 = vrcp.f32 %v1425_v1 }
 0x3d2   : > { %v1428_v0 = vpop.xlane.xlu0 %1427 }
 0x3d3   : > { %2740 = vrcp.f32 %v1428_v0 }
 0x3d6   : > { %v1431_v28 = vpop.xlane.xlu1 %1430 }
 0x3d7   : > { %2742 = vrcp.f32 %v1431_v28 }
 0x3d8   : > { %v2737_v18 = vpop.eup %2736 }
 0x3da   : > { %v1434_v43 = vpop.xlane.xlu0 %1433 }
 0x3db   : > { %2744 = vrcp.f32 %v1434_v43 }
 0x3dc   : > { %v2739_v58 = vpop.eup %2738 }
 0x3de   : > { %v1437_v13 = vpop.xlane.xlu1 %1436 }
 0x3df   : > { %2746 = vrcp.f32 %v1437_v13 }
 0x3e0   : > { %v2741_v46 = vpop.eup %2740 }
 0x3e2   : > { %v1440_v54 = vpop.xlane.xlu0 %1439 }
 0x3e3   : > { %2748 = vrcp.f32 %v1440_v54 }
 0x3e4   : > { %v2743_v4 = vpop.eup %2742 }
 0x3e6   : > { %v1443_v6 = vpop.xlane.xlu1 %1442 }
 0x3e7   : > { %2750 = vrcp.f32 %v1443_v6 }
 0x3e8   : > { %v2745_v7 = vpop.eup %2744 }
 0x3ea   : > { %v1446_v47 = vpop.xlane.xlu0 %1445 }
 0x3eb   : > { %2752 = vrcp.f32 %v1446_v47 }
 0x3ec   : > { %v2747_v9 = vpop.eup %2746 }
 0x3ee   : > { %v1449_v51 = vpop.xlane.xlu1 %1448 }
 0x3ef   : > { %2754 = vrcp.f32 %v1449_v51 }
 0x3f0   : > { %v2749_v57 = vpop.eup %2748 }
 0x3f2   : > { %v1452_v34 = vpop.xlane.xlu0 %1451 }
 0x3f3   : > { %2756 = vrcp.f32 %v1452_v34 }
 0x3f4   : > { %v2751_v63 = vpop.eup %2750 }
 0x3f6   : > { %v1455_v26 = vpop.xlane.xlu1 %1454 }
 0x3f7   : > { %2758 = vrcp.f32 %v1455_v26 }
 0x3f8   : > { %v2753_v49 = vpop.eup %2752 }
 0x3fa   : > { %v1458_v25 = vpop.xlane.xlu0 %1457 }
 0x3fb   : > { %2760 = vrcp.f32 %v1458_v25 }
 0x400   : > { %v2226_v48 = vpop.f32.mrf.mxu0 }
 0x402   : > { %v2227_v33 = vpop.f32.mrf.mxu0 }
 0x403   : > { %v2228_v59 = vadd.f32 %v2227_v33, %v2226_v48 }
 0x404   : > { %v2229_v29 = vpop.f32.mrf.mxu0 }
 0x405   : > { %v1645_v52 = vmul.f32 %v2737_v18, %v2228_v59  ;;  %v2755_v59 = vpop.eup %2754  ;;  %v1461_v18 = vpop.xlane.xlu1 %1460 }
 0x406   : > { %v2230_v40 = vpop.f32.mrf.mxu0  ;;  %2762 = vrcp.f32 %v1461_v18 }
 0x407   : > { %v1661_v27 = vadd.f32 %v1645_v52, %v1645_v52  ;;  %v2231_v30 = vadd.f32 %v2230_v40, %v2229_v29 }
 0x408   : > { %v2232_v32 = vpop.f32.mrf.mxu0 }
 0x409   : > { %v1646_v61 = vmul.f32 %v2739_v58, %v2231_v30  ;;  %2554 = vmatprep.mubr.f32.mxu1 %v1661_v27  ;;  %v2757_v30 = vpop.eup %2756  ;;  %v1464_v58 = vpop.xlane.xlu0 %1463 }
 0x40a   : > { %v2233_v60 = vpop.f32.mrf.mxu0  ;;  %2764 = vrcp.f32 %v1464_v58 }
 0x40b   : > { %v1662_v39 = vadd.f32 %v1646_v61, %v1646_v61  ;;  %v2234_v41 = vadd.f32 %v2233_v60, %v2232_v32 }
 0x40c   : > { %v2235_v23 = vpop.f32.mrf.mxu0 }
 0x40d   : > { %v1647_v42 = vmul.f32 %v2741_v46, %v2234_v41  ;;  %2555 = vmatmul.mubr.f32.vlgmr.msra.gmra.mxu1 %v1662_v39  ;;  %v2759_v41 = vpop.eup %2758  ;;  %v1467_v46 = vpop.xlane.xlu1 %1466 }
 0x40e   : > { %v2236_v12 = vpop.f32.mrf.mxu0  ;;  %2766 = vrcp.f32 %v1467_v46 }
 0x40f   : > { %v1663_v31 = vadd.f32 %v1647_v42, %v1647_v42  ;;  %v2237_v55 = vadd.f32 %v2236_v12, %v2235_v23 }
 0x410   : > { %v2238_v44 = vpop.f32.mrf.mxu0 }
 0x411   : > { %v1648_v36 = vmul.f32 %v2743_v4, %v2237_v55  ;;  %2557 = vmatprep.mubr.f32.mxu1 %v1663_v31  ;;  %v2761_v55 = vpop.eup %2760 }
 0x412   : > { %v2239_v16 = vpop.f32.mrf.mxu0 }
 0x413   : > { %v1664_v56 = vadd.f32 %v1648_v36, %v1648_v36  ;;  %v2240_v22 = vadd.f32 %v2239_v16, %v2238_v44 }
 0x414   : > { %v2241_v62 = vpop.f32.mrf.mxu0 }
 0x415   : > { %v1649_v38 = vmul.f32 %v2745_v7, %v2240_v22  ;;  %2558 = vmatmul.mubr.f32.gmra.mxu1 %v1664_v56  ;;  %v2763_v56 = vpop.eup %2762 }
 0x416   : > { %v2242_v45 = vpop.f32.mrf.mxu0 }
 0x417   : > { %v1665_v24 = vadd.f32 %v1649_v38, %v1649_v38  ;;  %v2243_v37 = vadd.f32 %v2242_v45, %v2241_v62  ;;  %v2765_v45 = vpop.eup %2764 }
 0x418   : > { %v2244_v17 = vpop.f32.mrf.mxu0 }
 0x419   : > { %v1650_v3 = vmul.f32 %v2747_v9, %v2243_v37  ;;  %2560 = vmatprep.mubr.f32.mxu1 %v1665_v24 }
 0x41a   : > { %v2245_v20 = vpop.f32.mrf.mxu0 }
 0x41b   : > { %v1666_v2 = vadd.f32 %v1650_v3, %v1650_v3  ;;  %v2246_v10 = vadd.f32 %v2245_v20, %v2244_v17  ;;  %v2767_v3 = vpop.eup %2766 }
 0x41c   : > { %v2247_v5 = vpop.f32.mrf.mxu0 }
 0x41d   : > { %v1651_v53 = vmul.f32 %v2749_v57, %v2246_v10  ;;  %2561 = vmatmul.mubr.f32.gmra.mxu1 %v1666_v2  ;;  %v1995_v10 = vld [vmem:[%s3621_s8] ss:$0 sm:$0xff] }
 0x41e   : > { %v2248_v14 = vpop.f32.mrf.mxu0 }
 0x41f   : > { %v1667_v21 = vadd.f32 %v1651_v53, %v1651_v53  ;;  %v2249_v19 = vadd.f32 %v2248_v14, %v2247_v5 }
 0x420   : > { %v2250_v50 = vpop.f32.mrf.mxu0 }
 0x421   : > { %v1652_v35 = vmul.f32 %v2751_v63, %v2249_v19  ;;  %2563 = vmatprep.mubr.f32.mxu1 %v1667_v21 }
 0x422   : > { %v2251_v15 = vpop.f32.mrf.mxu0 }
 0x423   : > { %v1668_v11 = vadd.f32 %v1652_v35, %v1652_v35  ;;  %v2252_v8 = vadd.f32 %v2251_v15, %v2250_v50 }
 0x424   : > { %v2253_v1 = vpop.f32.mrf.mxu0 }
 0x425   : > { %v1653_v0 = vmul.f32 %v2753_v49, %v2252_v8  ;;  %2564 = vmatmul.mubr.f32.gmra.mxu1 %v1668_v11 }
 0x426   : > { %v2254_v28 = vpop.f32.mrf.mxu0 }
 0x427   : > { %v1669_v48 = vadd.f32 %v1653_v0, %v1653_v0  ;;  %v2255_v33 = vadd.f32 %v2254_v28, %v2253_v1 }
 0x428   : > { %v2256_v43 = vpop.f32.mrf.mxu0 }
 0x429   : > { %v1654_v29 = vmul.f32 %v2755_v59, %v2255_v33  ;;  %2566 = vmatprep.mubr.f32.mxu1 %v1669_v48 }
 0x42a   : > { %v2257_v52 = vpop.f32.mrf.mxu0 }
 0x42b   : > { %v1670_v40 = vadd.f32 %v1654_v29, %v1654_v29  ;;  %v2258_v27 = vadd.f32 %v2257_v52, %v2256_v43 }
 0x42c   : > { %v2259_v13 = vpop.f32.mrf.mxu0 }
 0x42d   : > { %v1655_v32 = vmul.f32 %v2757_v30, %v2258_v27  ;;  %2567 = vmatmul.mubr.f32.gmra.mxu1 %v1670_v40 }
 0x42e   : > { %v2260_v61 = vpop.f32.mrf.mxu0 }
 0x42f   : > { %v1671_v60 = vadd.f32 %v1655_v32, %v1655_v32  ;;  %v2261_v39 = vadd.f32 %v2260_v61, %v2259_v13 }
 0x430   : > { %v2262_v54 = vpop.f32.mrf.mxu0 }
 0x431   : > { %v1656_v23 = vmul.f32 %v2759_v41, %v2261_v39  ;;  %2569 = vmatprep.mubr.f32.mxu1 %v1671_v60 }
 0x432   : > { %v2263_v42 = vpop.f32.mrf.mxu0 }
 0x433   : > { %v1672_v12 = vadd.f32 %v1656_v23, %v1656_v23  ;;  %v2264_v31 = vadd.f32 %v2263_v42, %v2262_v54 }
 0x434   : > { %v2265_v4 = vpop.f32.mrf.mxu0 }
 0x435   : > { %v1657_v6 = vmul.f32 %v2761_v55, %v2264_v31  ;;  %2570 = vmatmul.mubr.f32.gmra.mxu1 %v1672_v12 }
 0x436   : > { %v2266_v44 = vpop.f32.mrf.mxu0 }
 0x437   : > { %v1673_v36 = vadd.f32 %v1657_v6, %v1657_v6  ;;  %v2267_v16 = vadd.f32 %v2266_v44, %v2265_v4 }
 0x438   : > { %v2268_v22 = vpop.f32.mrf.mxu0 }
 0x439   : > { %v1658_v7 = vmul.f32 %v2763_v56, %v2267_v16  ;;  %2572 = vmatprep.mubr.f32.mxu1 %v1673_v36 }
 0x43a   : > { %v2269_v47 = vpop.f32.mrf.mxu0 }
 0x43b   : > { %v1674_v62 = vadd.f32 %v1658_v7, %v1658_v7  ;;  %v2270_v38 = vadd.f32 %v2269_v47, %v2268_v22 }
 0x43c   : > { %v2271_v24 = vpop.f32.mrf.mxu0 }
 0x43d   : > { %v1659_v37 = vmul.f32 %v2765_v45, %v2270_v38  ;;  %2573 = vmatmul.mubr.f32.gmra.mxu1 %v1674_v62 }
 0x43e   : > { %v2272_v9 = vpop.f32.mrf.mxu0 }
 0x43f   : > { %v1675_v51 = vadd.f32 %v1659_v37, %v1659_v37  ;;  %v2273_v17 = vadd.f32 %v2272_v9, %v2271_v24 }
 0x441   : > { %v1660_v20 = vmul.f32 %v2767_v3, %v2273_v17  ;;  %2575 = vmatprep.mubr.f32.mxu1 %v1675_v51 }
 0x443   : > { %v1676_v2 = vadd.f32 %v1660_v20, %v1660_v20 }
 0x445   : > { %2576 = vmatmul.mubr.f32.gmra.mxu1 %v1676_v2 }
 0x4cd   : > { %v2556_v57 = vpop.f32.mrf.mxu1 }
 0x4ce   : > { %v1772_v34 = vadd.f32 %v2556_v57, %v1995_v10 }
 0x4cf   : > { %v1766_v5 = vpop.f32.mrf.mxu1 }
 0x4d0   : > { %1846 = vst [vmem:[%s3544_s1 + $0x8] sm:$0xff] %v1772_v34  ;;  %v1767_v53 = vadd.f32 %v1995_v10, %v1766_v5 }
 0x4d2   : > { %1845 = vst [vmem:[%s3544_s1] sm:$0xff] %v1767_v53 }
 0x4d5   : > { %v2559_v14 = vpop.f32.mrf.mxu1 }
 0x4d6   : > { %v1782_v21 = vadd.f32 %v2559_v14, %v1995_v10 }
 0x4d7   : > { %v1776_v19 = vpop.f32.mrf.mxu1 }
 0x4d8   : > { %1848 = vst [vmem:[%s3544_s1 + $0x18] sm:$0xff] %v1782_v21  ;;  %v1777_v63 = vadd.f32 %v1995_v10, %v1776_v19 }
 0x4da   : > { %1847 = vst [vmem:[%s3544_s1 + $0x10] sm:$0xff] %v1777_v63 }
 0x4dd   : > { %v2562_v26 = vpop.f32.mrf.mxu1 }
 0x4de   : > { %v1792_v50 = vadd.f32 %v2562_v26, %v1995_v10 }
 0x4df   : > { %v1786_v35 = vpop.f32.mrf.mxu1 }
 0x4e0   : > { %1850 = vst [vmem:[%s3544_s1 + $0x28] sm:$0xff] %v1792_v50  ;;  %v1787_v15 = vadd.f32 %v1995_v10, %v1786_v35 }
 0x4e2   : > { %1849 = vst [vmem:[%s3544_s1 + $0x20] sm:$0xff] %v1787_v15 }
 0x4e5   : > { %v2565_v11 = vpop.f32.mrf.mxu1 }
 0x4e6   : > { %v1802_v8 = vadd.f32 %v2565_v11, %v1995_v10 }
 0x4e7   : > { %v1796_v49 = vpop.f32.mrf.mxu1 }
 0x4e8   : > { %1852 = vst [vmem:[%s3544_s1 + $0x38] sm:$0xff] %v1802_v8  ;;  %v1797_v25 = vadd.f32 %v1995_v10, %v1796_v49 }
 0x4ea   : > { %1851 = vst [vmem:[%s3544_s1 + $0x30] sm:$0xff] %v1797_v25 }
 0x4ed   : > { %v2568_v1 = vpop.f32.mrf.mxu1 }
 0x4ee   : > { %v1812_v0 = vadd.f32 %v2568_v1, %v1995_v10 }
 0x4ef   : > { %v1806_v28 = vpop.f32.mrf.mxu1 }
 0x4f0   : > { %1854 = vst [vmem:[%s3544_s1 + $0x48] sm:$0xff] %v1812_v0  ;;  %v1807_v48 = vadd.f32 %v1995_v10, %v1806_v28 }
 0x4f2   : > { %1853 = vst [vmem:[%s3544_s1 + $0x40] sm:$0xff] %v1807_v48 }
 0x4f5   : > { %v2571_v33 = vpop.f32.mrf.mxu1 }
 0x4f6   : > { %v1822_v59 = vadd.f32 %v2571_v33, %v1995_v10 }
 0x4f7   : > { %v1816_v18 = vpop.f32.mrf.mxu1 }
 0x4f8   : > { %1856 = vst [vmem:[%s3544_s1 + $0x58] sm:$0xff] %v1822_v59  ;;  %v1817_v43 = vadd.f32 %v1995_v10, %v1816_v18 }
 0x4fa   : > { %1855 = vst [vmem:[%s3544_s1 + $0x50] sm:$0xff] %v1817_v43 }
 0x4fd   : > { %v2574_v29 = vpop.f32.mrf.mxu1 }
 0x4fe   : > { %v1832_v52 = vadd.f32 %v2574_v29, %v1995_v10 }
 0x4ff   : > { %v1826_v40 = vpop.f32.mrf.mxu1 }
 0x500   : > { %1858 = vst [vmem:[%s3544_s1 + $0x68] sm:$0xff] %v1832_v52  ;;  %v1827_v27 = vadd.f32 %v1995_v10, %v1826_v40 }
 0x502   : > { %1857 = vst [vmem:[%s3544_s1 + $0x60] sm:$0xff] %v1827_v27 }
 0x505   : > { %v2577_v30 = vpop.f32.mrf.mxu1 }
 0x506   : > { %v1842_v58 = vadd.f32 %v2577_v30, %v1995_v10 }
 0x507   : > { %v1836_v13 = vpop.f32.mrf.mxu1 }
 0x508   : > { %1860 = vst [vmem:[%s3544_s1 + $0x78] sm:$0xff] %v1842_v58  ;;  %v1837_v32 = vadd.f32 %v1995_v10, %v1836_v13 }
 0x50a   : > { %1859 = vst [vmem:[%s3544_s1 + $0x70] sm:$0xff] %v1837_v32 }
 0x50b   : > { %2911 = shalt.err (!%p2908_p13)
}
 0x50c   : > { %s2912_s14 = scalar_lea.hbm %s3565_s16, 2048  ;;  %s2916_s22 = scalar_lea.hbm %s3622_s9, 4096 }
 0x50d   : > { %p2913_p0 = scmp.ne.s32.totalorder %s3565_s16, %s2912_s14  ;;  %p2917_p2 = scmp.lt.s32.totalorder %s3565_s16, %s3622_s9 }
 0x50e   : > { %p2918_p12 = scmp.lt.s32.totalorder %s2916_s22, %s2912_s14 }
 0x50f   : > { %p2914_p3 = pnand %p2913_p0, %p3070_p5 }
 0x510   : > { %p2919_p10 = por %p2918_p12, %p2917_p2 }
 0x511   : > { %p2915_p1 = pneg %p2914_p3 }
 0x513   : > { %p2920_p4 = pnand %p2919_p10, %p2915_p1 }
 0x515   : > { %2923 = shalt.err (!%p2920_p4)
}
 0x516   : > { %s2980_s24 = smov 128   ;;  %s2981_s29 = smov 8  }
 0x517   : > { %2598 = dma.vmem_to_hbm [thread:$0]  (%p3070_p5), %s3567_s21, 2048, %s3565_s16, %s3573_s17, %s2980_s24, %s2980_s24, %s2981_s29  }
 0x518 PF: > { %p2630_p9 = scmp.ge.s32.totalorder %s2970_s12, 2  ;;  %s1890_s13 = sand.u32 1, %s2958_s30  }
 0x519   : > { %s1891_s26 = scalar_lea.sflag [#allocation4], %s1890_s13 }
 0x51a   : > { %p2617_p8 = pnand %p2630_p9, %p3074_p6 }
 0x51c   : > { %p2618_p7 = pneg %p2617_p8 }
 0x51e   : > { %2953 = dma.done.wait (%p2618_p7), %s1891_s26, 2048  }
 0x51f   : > { %2955 = vsyncadd (%p2618_p7), %s1891_s26, 4294965248  ;;  %s3638_s25 = sld [smem:[#allocation16_spill]]  ;;  %p22_p11 = scmp.ge.s32.totalorder %s3057_s15, 4  }
 0x520   : > { %s3639_s30 = smov %s2962_s10  ;;  %s3640_s10 = smov %s2966_s11 }
 0x521   : > { %s3642_s12 = smov %s3057_s15  ;;  %24 = sbr.rel (!%p22_p11) target bundleno = 8 (0x8), region = 110 }
 0x525   : > { %s3641_s11 = smov %s3638_s25 }
 0x526   :  { %1896 = vsyncpa [#allocation3], 1 }
 0x527   :  { %1898 = vsyncpa [#allocation3 + $0x1], 1 }
 0x528   :  { %1899 = vsyncpa [#allocation6], 1 }
 0x529   :  { %1900 = vsyncpa [#allocation9], 1 }
 0x52a   :  { %1901 = vsyncpa [#allocation4], 1 }
 0x52b   :  { %1903 = vsyncpa [#allocation4 + $0x1], 1 }

</bundles_post_ra>
